<compile_context>
chip_gen: v7x
topology: tpu7x:2x2x1
jax: 0.10.0
libtpu: 0.0.40
codegen_flags: <defaults>
</compile_context>

<pallas_src>
import functools

import jax
import jax.numpy as jnp
from jax import lax
from jax.experimental import pallas as pl
from jax.experimental.pallas import tpu as pltpu


def _rotate_kernel(n, k_ref, img_ref, lbl_ref, img_out_ref, lbl_out_ref):
    # k_ref: SMEM scalar prefetch, shape (1,) int32; 1 = 90, 2 = 180, 3 = 270 deg
    #        (code 0 / identity never reaches the kernel: handled by lax.cond).
    # img_ref: (C, n*n) and lbl_ref: (1, n*n), flattened row-major (p = i*n + j).
    k = k_ref[0]
    nn = n * n

    # Destination flat index q = i*n + j; source flat index per rotation code:
    #   k=1: src = j*n + (n-1-i)        (out[i,j] = x[j,     n-1-i])
    #   k=2: src = (n-1-i)*n + (n-1-j)  (out[i,j] = x[n-1-i, n-1-j])
    #   k=3: src = (n-1-j)*n + i        (out[i,j] = x[n-1-j, i    ])
    q = lax.broadcasted_iota(jnp.int32, (1, nn), 1)
    if n & (n - 1) == 0:                # power-of-two spatial size: shift/and only
        shift = n.bit_length() - 1
        qi = q >> shift
        qj = q & (n - 1)
    else:                               # general case (never traced for n=16)
        qi = q // n
        qj = q - qi * n
    src1 = qj * n + (n - 1 - qi)
    src2 = (n - 1 - qi) * n + (n - 1 - qj)
    src3 = (n - 1 - qj) * n + qi
    # Arithmetic blend on the SMEM scalar k (no per-code branches / selects).
    w1 = (k == 1).astype(jnp.int32)
    w2 = (k == 2).astype(jnp.int32)
    w3 = (k == 3).astype(jnp.int32)
    src = w1 * src1 + w2 * src2 + w3 * src3                    # (1, nn)

    # Permutation matrix P[p, q] = 1 iff p == src(q), so out_flat = x_flat @ P.
    p_idx = lax.broadcasted_iota(jnp.int32, (nn, nn), 0)
    perm = (p_idx == src).astype(jnp.float32)                  # (nn, nn)

    def rotate(x_ref, o_ref):
        # Standard (M,K)x(K,N) layout (no hidden operand transposes). HIGHEST
        # precision keeps the 0/1 permutation matmul exact: f32 values are not
        # bf16-truncated; integer labels routed via f32 are exact for |v| < 2^24.
        y = jnp.dot(x_ref[...].astype(jnp.float32), perm,
                    preferred_element_type=jnp.float32,
                    precision=lax.Precision.HIGHEST)
        o_ref[...] = y.astype(o_ref.dtype)

    rotate(img_ref, img_out_ref)
    rotate(lbl_ref, lbl_out_ref)


def _rotate_pair(img, label, code):
    """Rotate img (C,H,W) and label (H,W) by `code` in {1,2,3} quarter turns."""
    C, H, W = img.shape
    assert H == W, "exact 90-degree rotation without expand requires square images"
    assert label.shape == (H, W)
    nn = H * W

    # Free row-major reshapes: the lane dimension becomes H*W (=256 here, a
    # multiple of 128) -> unmasked lane-dense stores in the kernel.
    img_flat = img.reshape(C, nn)
    lbl_flat = label.reshape(1, nn)
    k_arr = jnp.reshape(code.astype(jnp.int32), (1,))

    # TODO(synk): for production image sizes (e.g. 3x1024x1024) do NOT keep
    # whole-array blocks: tile H in multiples of 8 / W in multiples of 128,
    # push the coarse tile rotation into the scalar-prefetch-driven index_map
    # (kernel only does the intra-tile flip), and add a leading batch grid axis
    # marked "parallel" to use v7x's 2 TensorCores within its 64 MiB VMEM.
    img_out, lbl_out = pl.pallas_call(
        functools.partial(_rotate_kernel, H),
        out_shape=(jax.ShapeDtypeStruct((C, nn), img.dtype),
                   jax.ShapeDtypeStruct((1, nn), label.dtype)),
        grid_spec=pltpu.PrefetchScalarGridSpec(
            num_scalar_prefetch=1,
            grid=(1,),
            in_specs=[
                pl.BlockSpec((C, nn), lambda i, k: (0, 0)),   # img (flattened)
                pl.BlockSpec((1, nn), lambda i, k: (0, 0)),   # label (flattened)
            ],
            out_specs=[
                pl.BlockSpec((C, nn), lambda i, k: (0, 0)),
                pl.BlockSpec((1, nn), lambda i, k: (0, 0)),
            ],
        ),
        # Input 0 is the scalar-prefetch code; alias img->out0, label->out1 so
        # the rotate branch runs in place when the inputs are donated.
        input_output_aliases={1: 0, 2: 1},
        compiler_params=pltpu.CompilerParams(
            dimension_semantics=("arbitrary",)),
    )(k_arr, img_flat, lbl_flat)
    return img_out.reshape(C, H, W), lbl_out.reshape(H, W)


@functools.partial(jax.jit, static_argnames=("p",), donate_argnums=(0, 1))
def random_rotation_dl(img, label, key, p=0.5):
    """JAX/Pallas equivalent of RandomRotation_DL.forward((img, label)).

    img:   (C, H, W)   label: (H, W).  img/label are donated (in-place friendly).
    """
    k1, k2 = jax.random.split(key)
    r1 = jax.random.uniform(k1, ())   # mirrors torch.rand(1) gate
    r2 = jax.random.uniform(k2, ())   # mirrors torch.rand(1) angle pick
    angle_code = jnp.where(r2 < 0.33, 1,
                 jnp.where(r2 < 0.66, 2, 3)).astype(jnp.int32)

    def rotate_branch(operands):
        im, lb, code = operands
        return _rotate_pair(im, lb, code)

    def identity_branch(operands):
        im, lb, _ = operands
        return im, lb

    # Identity case skips the kernel; with donation + aliasing it is a no-op.
    return lax.cond(r1 < p, rotate_branch, identity_branch,
                    (img, label, angle_code))


if __name__ == "__main__":
    key = jax.random.PRNGKey(0)
    k_img, k_lbl, k_rot = jax.random.split(key, 3)

    C, H, W = 4, 16, 16
    img = jax.random.normal(k_img, (C, H, W), dtype=jnp.float32)
    label = jax.random.uniform(k_lbl, (H, W), dtype=jnp.float32)

    # 1) Deterministically exercise every rotation code of the Pallas kernel.
    for code in (1, 2, 3):
        io, lo = _rotate_pair(img, label, jnp.int32(code))
        jax.block_until_ready(io)
        jax.block_until_ready(lo)
        ref_i = jnp.rot90(img, k=code, axes=(-2, -1))
        ref_l = jnp.rot90(label, k=code, axes=(-2, -1))
        assert jnp.allclose(io, ref_i, atol=1e-5), f"img mismatch for code={code}"
        assert jnp.allclose(lo, ref_l, atol=1e-5), f"label mismatch for code={code}"

    # 2) Full module semantics (random gate + random angle).  The reference is
    #    computed BEFORE the call because img/label are donated to it.
    k1, k2 = jax.random.split(k_rot)
    r1 = float(jax.random.uniform(k1, ()))
    r2 = float(jax.random.uniform(k2, ()))
    if r1 < 0.5:
        ref_code = 1 if r2 < 0.33 else (2 if r2 < 0.66 else 3)
    else:
        ref_code = 0
    if ref_code:
        ref_img = jnp.rot90(img, k=ref_code, axes=(-2, -1))
        ref_lbl = jnp.rot90(label, k=ref_code, axes=(-2, -1))
    else:
        ref_img = img + 0.0    # fresh buffers: img/label are donated below
        ref_lbl = label + 0.0

    img_out, label_out = random_rotation_dl(img, label, k_rot, p=0.5)
    jax.block_until_ready(img_out)
    jax.block_until_ready(label_out)

    assert jnp.allclose(img_out, ref_img, atol=1e-5)
    assert jnp.allclose(label_out, ref_lbl, atol=1e-5)

    print("KERNEL_OK")
</pallas_src>

<mosaic_0001>
module attributes {stable_mosaic.version = 11 : i64} {
  func.func @_rotate_kernel(%arg0: i32, %arg1: memref<1xi32, #tpu.memory_space<smem>>, %arg2: memref<4x256xf32, #tpu.memory_space<vmem>>, %arg3: memref<1x256xf32, #tpu.memory_space<vmem>>, %arg4: memref<4x256xf32, #tpu.memory_space<vmem>>, %arg5: memref<1x256xf32, #tpu.memory_space<vmem>>) attributes {dimension_semantics = [#tpu.dimension_semantics<arbitrary>], iteration_bounds = array<i64: 1>, scalar_prefetch = 1 : i64, scratch_operands = 0 : i64, tpu.core_type = #tpu.core_type<tc>, window_params = [{pipeline_mode = #tpu.pipeline_mode<synchronous>, transform_indices = @transform_0, window_bounds = array<i64: 4, 256>}, {pipeline_mode = #tpu.pipeline_mode<synchronous>, transform_indices = @transform_1, window_bounds = array<i64: 1, 256>}, {pipeline_mode = #tpu.pipeline_mode<synchronous>, transform_indices = @transform_2, window_bounds = array<i64: 4, 256>}, {pipeline_mode = #tpu.pipeline_mode<synchronous>, transform_indices = @transform_3, window_bounds = array<i64: 1, 256>}]} {
    %c0 = arith.constant 0 : index
    %0 = memref.load %arg1[%c0] : memref<1xi32, #tpu.memory_space<smem>>
    %1 = tpu.iota {dimensions = array<i32: 1>} : vector<1x256xi32>
    %c4_i32 = arith.constant 4 : i32
    %2 = vector.broadcast %c4_i32 : i32 to vector<1x256xi32>
    %3 = arith.shrsi %1, %2 : vector<1x256xi32>
    %c15_i32 = arith.constant 15 : i32
    %4 = vector.broadcast %c15_i32 : i32 to vector<1x256xi32>
    %5 = arith.andi %1, %4 : vector<1x256xi32>
    %c16_i32 = arith.constant 16 : i32
    %6 = vector.broadcast %c16_i32 : i32 to vector<1x256xi32>
    %7 = arith.muli %5, %6 : vector<1x256xi32>
    %c15_i32_0 = arith.constant 15 : i32
    %8 = vector.broadcast %c15_i32_0 : i32 to vector<1x256xi32>
    %9 = arith.subi %8, %3 : vector<1x256xi32>
    %10 = arith.addi %7, %9 : vector<1x256xi32>
    %c15_i32_1 = arith.constant 15 : i32
    %11 = vector.broadcast %c15_i32_1 : i32 to vector<1x256xi32>
    %12 = arith.subi %11, %3 : vector<1x256xi32>
    %c16_i32_2 = arith.constant 16 : i32
    %13 = vector.broadcast %c16_i32_2 : i32 to vector<1x256xi32>
    %14 = arith.muli %12, %13 : vector<1x256xi32>
    %c15_i32_3 = arith.constant 15 : i32
    %15 = vector.broadcast %c15_i32_3 : i32 to vector<1x256xi32>
    %16 = arith.subi %15, %5 : vector<1x256xi32>
    %17 = arith.addi %14, %16 : vector<1x256xi32>
    %c15_i32_4 = arith.constant 15 : i32
    %18 = vector.broadcast %c15_i32_4 : i32 to vector<1x256xi32>
    %19 = arith.subi %18, %5 : vector<1x256xi32>
    %c16_i32_5 = arith.constant 16 : i32
    %20 = vector.broadcast %c16_i32_5 : i32 to vector<1x256xi32>
    %21 = arith.muli %19, %20 : vector<1x256xi32>
    %22 = arith.addi %21, %3 : vector<1x256xi32>
    %c1_i32 = arith.constant 1 : i32
    %23 = arith.cmpi eq, %0, %c1_i32 : i32
    %24 = arith.extui %23 : i1 to i32
    %c2_i32 = arith.constant 2 : i32
    %25 = arith.cmpi eq, %0, %c2_i32 : i32
    %26 = arith.extui %25 : i1 to i32
    %c3_i32 = arith.constant 3 : i32
    %27 = arith.cmpi eq, %0, %c3_i32 : i32
    %28 = arith.extui %27 : i1 to i32
    %29 = vector.broadcast %24 : i32 to vector<1x256xi32>
    %30 = arith.muli %29, %10 : vector<1x256xi32>
    %31 = vector.broadcast %26 : i32 to vector<1x256xi32>
    %32 = arith.muli %31, %17 : vector<1x256xi32>
    %33 = arith.addi %30, %32 : vector<1x256xi32>
    %34 = vector.broadcast %28 : i32 to vector<1x256xi32>
    %35 = arith.muli %34, %22 : vector<1x256xi32>
    %36 = arith.addi %33, %35 : vector<1x256xi32>
    %37 = tpu.iota {dimensions = array<i32: 0>} : vector<256x256xi32>
    %38 = vector.broadcast %36 : vector<1x256xi32> to vector<256x256xi32>
    %39 = arith.cmpi eq, %37, %38 : vector<256x256xi32>
    %40 = arith.extui %39 : vector<256x256xi1> to vector<256x256xi32>
    %41 = arith.sitofp %40 : vector<256x256xi32> to vector<256x256xf32>
    %c0_6 = arith.constant 0 : index
    %c0_7 = arith.constant 0 : index
    %42 = vector.load %arg2[%c0_6, %c0_7] : memref<4x256xf32, #tpu.memory_space<vmem>>, vector<4x256xf32>
    %cst = arith.constant dense<0.000000e+00> : vector<4x256xf32>
    %43 = tpu.matmul %42, %41, %cst {dimension_numbers = #tpu.dot_dimension_numbers<[1], [0], [0], [1], [0, 0, 1, 1], [], []>, precision = #tpu.contract_precision<fp32>} : vector<4x256xf32>, vector<256x256xf32>, vector<4x256xf32> -> vector<4x256xf32>
    %c0_8 = arith.constant 0 : index
    %c0_9 = arith.constant 0 : index
    %44 = vector.load %arg4[%c0_8, %c0_9] : memref<4x256xf32, #tpu.memory_space<vmem>>, vector<4x256xf32>
    tpu.vector_store %arg4[%c0_8, %c0_9], %43 {strides = array<i32>} : memref<4x256xf32, #tpu.memory_space<vmem>>, vector<4x256xf32>,
    %c0_10 = arith.constant 0 : index
    %c0_11 = arith.constant 0 : index
    %45 = vector.load %arg3[%c0_10, %c0_11] : memref<1x256xf32, #tpu.memory_space<vmem>>, vector<1x256xf32>
    %cst_12 = arith.constant dense<0.000000e+00> : vector<1x256xf32>
    %46 = tpu.matmul %45, %41, %cst_12 {dimension_numbers = #tpu.dot_dimension_numbers<[1], [0], [0], [1], [0, 0, 1, 1], [], []>, precision = #tpu.contract_precision<fp32>} : vector<1x256xf32>, vector<256x256xf32>, vector<1x256xf32> -> vector<1x256xf32>
    %c0_13 = arith.constant 0 : index
    %c0_14 = arith.constant 0 : index
    %47 = vector.load %arg5[%c0_13, %c0_14] : memref<1x256xf32, #tpu.memory_space<vmem>>, vector<1x256xf32>
    tpu.vector_store %arg5[%c0_13, %c0_14], %46 {strides = array<i32>} : memref<1x256xf32, #tpu.memory_space<vmem>>, vector<1x256xf32>,
    return
  }
  func.func @transform_0(%arg0: i32, %arg1: memref<1xi32, #tpu.memory_space<smem>>) -> (i32, i32) {
    %c0_i32 = arith.constant 0 : i32
    %c0_i32_0 = arith.constant 0 : i32
    %c0_i32_1 = arith.constant 0 : i32
    return %c0_i32, %c0_i32_0 : i32, i32
  }
  func.func @transform_1(%arg0: i32, %arg1: memref<1xi32, #tpu.memory_space<smem>>) -> (i32, i32) {
    %c0_i32 = arith.constant 0 : i32
    %c0_i32_0 = arith.constant 0 : i32
    %c0_i32_1 = arith.constant 0 : i32
    return %c0_i32, %c0_i32_0 : i32, i32
  }
  func.func @transform_2(%arg0: i32, %arg1: memref<1xi32, #tpu.memory_space<smem>>) -> (i32, i32) {
    %c0_i32 = arith.constant 0 : i32
    %c0_i32_0 = arith.constant 0 : i32
    %c0_i32_1 = arith.constant 0 : i32
    return %c0_i32, %c0_i32_0 : i32, i32
  }
  func.func @transform_3(%arg0: i32, %arg1: memref<1xi32, #tpu.memory_space<smem>>) -> (i32, i32) {
    %c0_i32 = arith.constant 0 : i32
    %c0_i32_0 = arith.constant 0 : i32
    %c0_i32_1 = arith.constant 0 : i32
    return %c0_i32, %c0_i32_0 : i32, i32
  }
}

</mosaic_0001>

<bundles_post_ra>
// kernel: tpu_custom_call.1
= control target key start
LH: loop header
LB: loop body
LE: loop exit
PB: predicated region body
PF: predicated region fallthrough
CT: control target
= control target key end

     0   :  { %11 = vsyncpa [#allocation5], 0  ;;  %s6473_s0 = inlined_call_operand.<no memory space> [shape: s32[1], index: 0, kind: input, shape index: {}]   ;;  %s6474_s1 = inlined_call_operand.hbm [shape: f32[4,256], index: 1, kind: input, shape index: {}, may-alias: {1,3}]   ;;  %s6475_s2 = inlined_call_operand.hbm [shape: f32[1,256], index: 2, kind: input, shape index: {}, may-alias: {2,4}]   ;;  %s6476_s3 = inlined_call_operand.hbm [shape: f32[4,256], index: 3, kind: output, shape index: {0}, may-alias: {1,3}]   ;;  %s6477_s4 = inlined_call_operand.hbm [shape: f32[1,256], index: 4, kind: output, shape index: {1}, may-alias: {2,4}]  }
   0x1   :  { %12 = vsyncpa [#allocation8], 0 }
   0x2   :  { %13 = vsyncpa [#allocation6], 0 }
   0x3   :  { %14 = vsyncpa [#allocation11], 0  ;;  %s4291_s15 = smov [#allocation4]   ;;  %s4292_s17 = smov [#allocation7]  }
   0x4   :  { %s21_s16 = sshll.u32 %s4291_s15, 4  ;;  %s31_s18 = sshll.u32 %s4292_s17, 4  ;;  %s22_s16 = int_to_ptr.vmem [resolvable:$true] %s21_s16  ;;  %s32_s18 = int_to_ptr.vmem [resolvable:$true] %s31_s18 }
   0x5   :  { %s4195_s21 = scalar_lea.hbm %s6474_s1, 128 }
   0x6   :  { %p4196_p0 = scmp.ne.s32.totalorder %s6474_s1, %s4195_s21  ;;  %p4199_p1 = scmp.lt.u32.totalorder %s4195_s21, %s6474_s1 }
   0x8   :  { %p4201_p2 = pnand %p4199_p1, %p4196_p0 }
   0xa   :  { %4204 = shalt.err (!%p4201_p2)
}
   0xb   :  { %s4205_s26 = scalar_lea.vmem %s22_s16, 128  ;;  %p4210_p4 = scmp.lt.s32.totalorder %s22_s16, %s22_s16 }
   0xc   :  { %p4206_p3 = scmp.ne.s32.totalorder %s22_s16, %s4205_s26  ;;  %p4211_p5 = scmp.lt.s32.totalorder %s4205_s26, %s4205_s26 }
   0xe   :  { %p4212_p6 = por %p4211_p5, %p4210_p4 }
  0x10   :  { %p4213_p7 = pnand %p4212_p6, %p4206_p3 }
  0x12   :  { %4216 = shalt.err (!%p4213_p7)
}
  0x13   :  { %24 = dma.hbm_to_vmem [thread:$0]  %s6474_s1, 128, %s22_s16, [#allocation5]  }
  0x14   :  { %s4217_s5 = scalar_lea.hbm %s6475_s2, 32 }
  0x15   :  { %p4218_p8 = scmp.ne.s32.totalorder %s6475_s2, %s4217_s5  ;;  %p4221_p9 = scmp.lt.u32.totalorder %s4217_s5, %s6475_s2 }
  0x17   :  { %p4223_p10 = pnand %p4221_p9, %p4218_p8 }
  0x19   :  { %4226 = shalt.err (!%p4223_p10)
}
  0x1a   :  { %s4227_s10 = scalar_lea.vmem %s32_s18, 32  ;;  %p4232_p12 = scmp.lt.s32.totalorder %s32_s18, %s32_s18 }
  0x1b   :  { %p4228_p11 = scmp.ne.s32.totalorder %s32_s18, %s4227_s10  ;;  %p4233_p13 = scmp.lt.s32.totalorder %s4227_s10, %s4227_s10 }
  0x1d   :  { %p4234_p0 = por %p4233_p13, %p4232_p12 }
  0x1f   :  { %p4235_p1 = pnand %p4234_p0, %p4228_p11 }
  0x21   :  { %4238 = shalt.err (!%p4235_p1)
}
  0x22   :  { %34 = dma.hbm_to_vmem [thread:$0]  %s6475_s2, 32, %s32_s18, [#allocation8]  }
  0x23   :  { %4283 = dma.done.wait [#allocation5], 128  }
  0x24   :  { %4284 = vsyncadd [#allocation5], 4294967168  ;;  %v6483_v0 = vlaneseq  ;;  %p65_p2 = scmp.eq.s32.totalorder %s6473_s0, 1  ;;  %p67_p3 = scmp.eq.s32.totalorder %s6473_s0, 2 }
  0x25   :  { %p69_p4 = scmp.eq.s32.totalorder %s6473_s0, 3 }
  0x26   :  { %4285 = dma.done.wait [#allocation8], 32  }
  0x27   :  { %4286 = vsyncadd [#allocation8], 4294967264  ;;  %v43_v1 = vand.u32 127, %v6483_v0  ;;  %s4357_s2 = scalar_select %p65_p2, 1, 0  ;;  %v4362_v2 = vshrl.u32 %v6483_v0, 7 }
  0x28   :  { %s4359_s18 = scalar_select %p67_p3, 1, 0  ;;  %v6546_v56 = vmov 0.0   ;;  %v6796_v61 = vmov 0 }
  0x29   :  { %6795 = vst [vmem:[#allocation16_spill] sm:$0xff] %v4362_v2  ;;  %v44_v3 = vadd.s32 128, %v43_v1  ;;  %v45_v4 = vshra.s32 %v43_v1, 4  ;;  %s4364_s19 = scalar_select %p69_p4, 1, 0  ;;  %v47_v5 = vand.u32 15, %v43_v1  ;;  %v71_v8 = vstv %s4357_s2 }
  0x2a   :  { %v74_v10 = vstv %s4359_s18  ;;  %v86_v11 = vadd.s32 8, %v4362_v2  ;;  %v4371_v21 = vadd.s32 16, %v4362_v2  ;;  %v4374_v28 = vadd.s32 24, %v4362_v2  ;;  %s4296_s0 = smov [#allocation9]   ;;  %s4297_s21 = smov [#allocation10]  }
  0x2b   :  { %v46_v6 = vshra.s32 %v44_v3, 4  ;;  %v48_v7 = vand.u32 15, %v44_v3  ;;  %v51_v9 = vsub.s32 15, %v45_v4  ;;  %v49_v12 = vmul.u32 16, %v47_v5  ;;  %s2927_s20 = sshll.u32 %s4296_s0, 4  ;;  %s2937_s22 = sshll.u32 %s4297_s21, 4  ;;  %s2928_s20 = int_to_ptr.vmem [resolvable:$true] %s2927_s20  ;;  %s2938_s22 = int_to_ptr.vmem [resolvable:$true] %s2937_s22 }
  0x2c   :  { %v57_v13 = vsub.s32 15, %v47_v5  ;;  %v79_v18 = vstv %s4364_s19  ;;  %v4377_v29 = vadd.s32 32, %v4362_v2  ;;  %v4380_v35 = vadd.s32 40, %v4362_v2  ;;  %s4239_s23 = scalar_lea.vmem %s2928_s20, 128  ;;  %p4244_p6 = scmp.lt.s32.totalorder %s2928_s20, %s2928_s20 }
  0x2d   :  { %v50_v14 = vmul.u32 16, %v48_v7  ;;  %v52_v15 = vsub.s32 15, %v46_v6  ;;  %v58_v16 = vsub.s32 15, %v48_v7  ;;  %v55_v17 = vmul.u32 16, %v51_v9  ;;  %p4240_p5 = scmp.ne.s32.totalorder %s2928_s20, %s4239_s23  ;;  %p4245_p7 = scmp.lt.s32.totalorder %s4239_s23, %s4239_s23 }
  0x2e   :  { %v53_v19 = vadd.s32 %v51_v9, %v49_v12  ;;  %v61_v20 = vmul.u32 16, %v57_v13  ;;  %v4383_v36 = vadd.s32 48, %v4362_v2  ;;  %v4386_v37 = vadd.s32 56, %v4362_v2 }
  0x2f   :  { %v54_v22 = vadd.s32 %v52_v15, %v50_v14  ;;  %v56_v23 = vmul.u32 16, %v52_v15  ;;  %v62_v24 = vmul.u32 16, %v58_v16  ;;  %v59_v25 = vadd.s32 %v57_v13, %v55_v17  ;;  %p4246_p8 = por %p4245_p7, %p4244_p6 }
  0x30   :  { %v63_v26 = vadd.s32 %v61_v20, %v45_v4  ;;  %v72_v27 = vmul.u32 %v71_v8, %v53_v19  ;;  %v4389_v41 = vadd.s32 64, %v4362_v2  ;;  %v4392_v42 = vadd.s32 72, %v4362_v2 }
  0x31   :  { %v60_v30 = vadd.s32 %v58_v16, %v56_v23  ;;  %v64_v31 = vadd.s32 %v62_v24, %v46_v6  ;;  %v73_v32 = vmul.u32 %v71_v8, %v54_v22  ;;  %v75_v33 = vmul.u32 %v74_v10, %v59_v25  ;;  %p4247_p9 = pnand %p4246_p8, %p4240_p5 }
  0x32   :  { %v80_v34 = vmul.u32 %v79_v18, %v63_v26  ;;  %v4395_v43 = vadd.s32 80, %v4362_v2  ;;  %v4398_v44 = vadd.s32 88, %v4362_v2  ;;  %v4401_v45 = vadd.s32 96, %v4362_v2 }
  0x33   :  { %v76_v38 = vmul.u32 %v74_v10, %v60_v30  ;;  %v81_v39 = vmul.u32 %v79_v18, %v64_v31  ;;  %v77_v40 = vadd.s32 %v75_v33, %v72_v27  ;;  %v4406_v48 = vadd.s32 104, %v4362_v2 }
  0x34   :  { %v4409_v49 = vadd.s32 112, %v4362_v2  ;;  %v4412_v50 = vadd.s32 120, %v4362_v2  ;;  %v4415_v51 = vadd.s32 128, %v4362_v2  ;;  %v4418_v52 = vadd.s32 136, %v4362_v2 }
  0x35   :  { %v78_v46 = vadd.s32 %v76_v38, %v73_v32  ;;  %v4403_v47 = vadd.s32 %v80_v34, %v77_v40  ;;  %v4421_v53 = vadd.s32 144, %v4362_v2  ;;  %v4429_v55 = vadd.s32 152, %v4362_v2 }
  0x36   :  { %v4435_v58 = vadd.s32 160, %v4362_v2  ;;  %v4438_v59 = vadd.s32 168, %v4362_v2  ;;  %v6799_v1 = vmov 0  ;;  %v6486_v3 = vmov 1.0|1.0  }
  0x37   :  { %v4423_v54 = vadd.s32 %v81_v39, %v78_v46  ;;  %vm117_vm0 = vcmp.eq.s32.totalorder %v4362_v2, %v4403_v47  ;;  %vm119_vm1 = vcmp.eq.s32.totalorder %v86_v11, %v4403_v47  ;;  %vm121_vm2 = vcmp.eq.s32.totalorder %v4371_v21, %v4403_v47 }
  0x38   :  { %v2951_v57 = vsel %vm117_vm0, 1.0, %v6546_v56  ;;  %v2953_v60 = vsel %vm119_vm1, 1.0, %v6546_v56  ;;  %vm4444_vm5 = vmpackc.low %vm119_vm1, %vm117_vm0  ;;  %vm123_vm6 = vcmp.eq.s32.totalorder %v4374_v28, %v4403_v47  ;;  %v6802_v5 = vmov 0 }
  0x39   :  { %vm118_vm3 = vcmp.eq.s32.totalorder %v4362_v2, %v4423_v54  ;;  %vm120_vm4 = vcmp.eq.s32.totalorder %v86_v11, %v4423_v54  ;;  %v6797_v61 = vsel %vm4444_vm5, 4294967295, %v6796_v61  ;;  %vm122_vm8 = vcmp.eq.s32.totalorder %v4371_v21, %v4423_v54  ;;  %vm4512_vm11 = vmpackc.low %vm123_vm6, %vm121_vm2 }
  0x3a   :  { %6798 = vst [vmem:[#allocation17_spill] sm:$0xff] %v6797_v61  ;;  %v2952_v62 = vsel %vm118_vm3, 1.0, %v6546_v56  ;;  %v2954_v63 = vsel %vm120_vm4, 1.0, %v6546_v56  ;;  %vm4452_vm7 = vmpackc.low %vm120_vm4, %vm118_vm3  ;;  %vm124_vm9 = vcmp.eq.s32.totalorder %v4374_v28, %v4423_v54  ;;  %v4466_v4 = vsub.f32 %v2951_v57, %v2951_v57 }
  0x3b   :  { %v6800_v1 = vsel %vm4452_vm7, 4294967295, %v6799_v1  ;;  %3400 = vmatprep.subr.msk.bf16.mxu0 %vm4452_vm7, %v6486_v3  ;;  %3784 = vmatprep.subr.msk.bf16.mxu1 %vm4452_vm7, %v6486_v3  ;;  %vm4468_vm10 = vmpackc.low %vm124_vm9, %vm122_vm8  ;;  %v2955_v6 = vsel %vm121_vm2, 1.0, %v6546_v56  ;;  %v4477_v7 = vadd.s32 176, %v4362_v2  ;;  %v4480_v8 = vadd.s32 184, %v4362_v2 }
  0x3c   :  { %6801 = vst [vmem:[#allocation18_spill] sm:$0xff] %v6800_v1  ;;  %v6803_v5 = vsel %vm4468_vm10, 4294967295, %v6802_v5  ;;  %v4482_v9 = vsub.f32 %v2952_v62, %v2952_v62  ;;  %3402 = vmatpush1.bf16.msk.msra.mxu0 %vm4444_vm5, %v6486_v3  ;;  %v4487_v10 = vsub.f32 %v2953_v60, %v2953_v60  ;;  %3786 = vmatpush1.bf16.msk.msra.mxu1 %vm4444_vm5, %v6486_v3  ;;  %v2956_v11 = vsel %vm122_vm8, 1.0, %v6546_v56 }
  0x3d   :  { %6804 = vst [vmem:[#allocation19_spill] sm:$0xff] %v6803_v5  ;;  %v2958_v12 = vsel %vm124_vm9, 1.0, %v6546_v56  ;;  %v4494_v13 = vsub.f32 %v2954_v63, %v2954_v63  ;;  %3404 = vmatprep.subr.msk.bf16.mxu0 %vm4468_vm10, %v6486_v3  ;;  %3788 = vmatprep.subr.msk.bf16.mxu1 %vm4468_vm10, %v6486_v3  ;;  %v2957_v14 = vsel %vm123_vm6, 1.0, %v6546_v56  ;;  %v6807_v15 = vmov 0 }
  0x3e   :  { %6805 = vst [vmem:[#allocation20_spill] sm:$0xff] %v4482_v9  ;;  %v6808_v15 = vsel %vm4512_vm11, 4294967295, %v6807_v15  ;;  %vm126_vm12 = vcmp.eq.s32.totalorder %v4377_v29, %v4423_v54  ;;  %vm128_vm13 = vcmp.eq.s32.totalorder %v4380_v35, %v4423_v54  ;;  %v6810_v18 = vmov 0 }
  0x3f   :  { %6806 = vst [vmem:[#allocation21_spill] sm:$0xff] %v4494_v13  ;;  %6809 = vst [vmem:[#allocation22_spill] sm:$0xff] %v6808_v15  ;;  %v2960_v16 = vsel %vm126_vm12, 1.0, %v6546_v56  ;;  %v2962_v17 = vsel %vm128_vm13, 1.0, %v6546_v56  ;;  %vm125_vm15 = vcmp.eq.s32.totalorder %v4377_v29, %v4403_v47  ;;  %vm127_vm0 = vcmp.eq.s32.totalorder %v4380_v35, %v4403_v47 }
  0x40   :  { %vm4522_vm14 = vmpackc.low %vm128_vm13, %vm126_vm12  ;;  %v4530_v19 = vsub.f32 %v2956_v11, %v2956_v11  ;;  %v4532_v20 = vsub.f32 %v2958_v12, %v2958_v12  ;;  %v4534_v21 = vsub.f32 %v2955_v6, %v2955_v6  ;;  %v2959_v22 = vsel %vm125_vm15, 1.0, %v6546_v56  ;;  %3406 = vmatpush1.bf16.msk.msra.mxu0 %vm4512_vm11, %v6486_v3  ;;  %3790 = vmatpush1.bf16.msk.msra.mxu1 %vm4512_vm11, %v6486_v3 }
  0x41   :  { %v6811_v18 = vsel %vm4522_vm14, 4294967295, %v6810_v18  ;;  %v4543_v23 = vsub.f32 %v2957_v14, %v2957_v14  ;;  %v2961_v24 = vsel %vm127_vm0, 1.0, %v6546_v56  ;;  %vm130_vm1 = vcmp.eq.s32.totalorder %v4383_v36, %v4423_v54  ;;  %3408 = vmatprep.subr.msk.bf16.mxu0 %vm4522_vm14, %v6486_v3  ;;  %3792 = vmatprep.subr.msk.bf16.mxu1 %vm4522_vm14, %v6486_v3  ;;  %vm4573_vm2 = vmpackc.low %vm127_vm0, %vm125_vm15 }
  0x42   :  { %6812 = vst [vmem:[#allocation23_spill] sm:$0xff] %v6811_v18  ;;  %6813 = vst [vmem:[#allocation24_spill] sm:$0xff] %v4530_v19  ;;  %v4555_v25 = vadd.s32 192, %v4362_v2  ;;  %v4560_v26 = vsub.f32 %v2960_v16, %v2960_v16  ;;  %v4562_v27 = vsub.f32 %v2962_v17, %v2962_v17  ;;  %v6815_v28 = vmov 0 }
  0x43   :  { %6814 = vst [vmem:[#allocation25_spill] sm:$0xff] %v4534_v21  ;;  %v6816_v28 = vsel %vm4573_vm2, 4294967295, %v6815_v28  ;;  %vm132_vm3 = vcmp.eq.s32.totalorder %v4386_v37, %v4423_v54  ;;  %v2964_v30 = vsel %vm130_vm1, 1.0, %v6546_v56  ;;  %v4580_v31 = vsub.f32 %v2959_v22, %v2959_v22 }
  0x44   :  { %6817 = vst [vmem:[#allocation26_spill] sm:$0xff] %v6816_v28  ;;  %v2966_v32 = vsel %vm132_vm3, 1.0, %v6546_v56  ;;  %vm4583_vm4 = vmpackc.low %vm132_vm3, %vm130_vm1  ;;  %v6818_v33 = vmov 0  ;;  %vm129_vm6 = vcmp.eq.s32.totalorder %v4383_v36, %v4403_v47  ;;  %vm131_vm8 = vcmp.eq.s32.totalorder %v4386_v37, %v4403_v47  ;;  %3410 = vmatpush1.bf16.msk.msra.mxu0 %vm4573_vm2, %v6486_v3  ;;  %3794 = vmatpush1.bf16.msk.msra.mxu1 %vm4573_vm2, %v6486_v3 }
  0x45   :  { %v6819_v33 = vsel %vm4583_vm4, 4294967295, %v6818_v33  ;;  %v4591_v29 = vsub.f32 %v2961_v24, %v2961_v24  ;;  %v2963_v34 = vsel %vm129_vm6, 1.0, %v6546_v56  ;;  %v2965_v35 = vsel %vm131_vm8, 1.0, %v6546_v56  ;;  %3412 = vmatprep.subr.msk.bf16.mxu0 %vm4583_vm4, %v6486_v3  ;;  %3796 = vmatprep.subr.msk.bf16.mxu1 %vm4583_vm4, %v6486_v3  ;;  %vm4627_vm15 = vmpackc.low %vm131_vm8, %vm129_vm6 }
  0x46   :  { %6820 = vst [vmem:[#allocation27_spill] sm:$0xff] %v6819_v33  ;;  %vm134_vm9 = vcmp.eq.s32.totalorder %v4389_v41, %v4423_v54  ;;  %v4606_v37 = vsub.f32 %v2964_v30, %v2964_v30  ;;  %vm136_vm12 = vcmp.eq.s32.totalorder %v4392_v42, %v4423_v54  ;;  %vm133_vm13 = vcmp.eq.s32.totalorder %v4389_v41, %v4403_v47 }
  0x47   :  { %v2968_v38 = vsel %vm134_vm9, 1.0, %v6546_v56  ;;  %v4619_v39 = vsub.f32 %v2966_v32, %v2966_v32  ;;  %v6821_v40 = vmov 0  ;;  %v2970_v46 = vsel %vm136_vm12, 1.0, %v6546_v56  ;;  %vm4645_vm1 = vmpackc.low %vm136_vm12, %vm134_vm9 }
  0x48   :  { %v6822_v40 = vsel %vm4627_vm15, 4294967295, %v6821_v40  ;;  %vm135_vm0 = vcmp.eq.s32.totalorder %v4392_v42, %v4403_v47  ;;  %v2967_v57 = vsel %vm133_vm13, 1.0, %v6546_v56  ;;  %v4638_v60 = vsub.f32 %v2963_v34, %v2963_v34  ;;  %3414 = vmatpush1.bf16.msk.msra.mxu0 %vm4627_vm15, %v6486_v3  ;;  %3798 = vmatpush1.bf16.msk.msra.mxu1 %vm4627_vm15, %v6486_v3 }
  0x49   :  { %6823 = vst [vmem:[#allocation28_spill] sm:$0xff] %v6822_v40  ;;  %v4640_v62 = vsub.f32 %v2965_v35, %v2965_v35  ;;  %v6825_v36 = vmov 0  ;;  %v2969_v63 = vsel %vm135_vm0, 1.0, %v6546_v56  ;;  %vm138_vm3 = vcmp.eq.s32.totalorder %v4395_v43, %v4423_v54  ;;  %3416 = vmatprep.subr.msk.bf16.mxu0 %vm4645_vm1, %v6486_v3  ;;  %3800 = vmatprep.subr.msk.bf16.mxu1 %vm4645_vm1, %v6486_v3  ;;  %vm4692_vm12 = vmpackc.low %vm135_vm0, %vm133_vm13 }
  0x4a   :  { %v6826_v36 = vsel %vm4645_vm1, 4294967295, %v6825_v36  ;;  %v4655_v6 = vsub.f32 %v2968_v38, %v2968_v38  ;;  %v4657_v11 = vsub.f32 %v2970_v46, %v2970_v46  ;;  %vm140_vm6 = vcmp.eq.s32.totalorder %v4398_v44, %v4423_v54 }
  0x4b   :  { %6824 = vst [vmem:[#allocation29_spill] sm:$0xff] %v4640_v62  ;;  %6827 = vst [vmem:[#allocation30_spill] sm:$0xff] %v6826_v36  ;;  %v2972_v12 = vsel %vm138_vm3, 1.0, %v6546_v56  ;;  %v4671_v14 = vsub.f32 %v2967_v57, %v2967_v57  ;;  %vm6478_vm8 = vcmp.eq.s32.totalorder %v4395_v43, %v4403_v47  ;;  %vm6479_vm9 = vcmp.eq.s32.totalorder %v4398_v44, %v4403_v47 }
  0x4c   :  { %6828 = vst [vmem:[#allocation31_spill] sm:$0xff] %v4655_v6  ;;  %6829 = vst [vmem:[#allocation32_spill] sm:$0xff] %v4657_v11  ;;  %v4678_v16 = vadd.s32 200, %v4362_v2  ;;  %v6831_v17 = vmov 0  ;;  %v4696_v22 = vsub.f32 %v2969_v63, %v2969_v63  ;;  %v2974_v24 = vsel %vm140_vm6, 1.0, %v6546_v56  ;;  %3418 = vmatpush1.bf16.msk.msra.mxu0 %vm4692_vm12, %v6486_v3  ;;  %3802 = vmatpush1.bf16.msk.msra.mxu1 %vm4692_vm12, %v6486_v3 }
  0x4d   :  { %6830 = vst [vmem:[#allocation33_spill] sm:$0xff] %v4671_v14  ;;  %v6832_v17 = vsel %vm4692_vm12, 4294967295, %v6831_v17  ;;  %v2971_v30 = vsel %vm6478_vm8, 1.0, %v6546_v56  ;;  %v2973_v41 = vsel %vm6479_vm9, 1.0, %v6546_v56  ;;  %vm4716_vm13 = vmpackc.low %vm140_vm6, %vm138_vm3  ;;  %v6835_v42 = vmov 0 }
  0x4e   :  { %6833 = vst [vmem:[#allocation34_spill] sm:$0xff] %v6832_v17  ;;  %6834 = vst [vmem:[#allocation35_spill] sm:$0xff] %v4696_v22  ;;  %v6836_v42 = vsel %vm4716_vm13, 4294967295, %v6835_v42  ;;  %v4720_v32 = vsub.f32 %v2972_v12, %v2972_v12  ;;  %vm142_vm0 = vcmp.eq.s32.totalorder %v4401_v45, %v4423_v54  ;;  %vm6481_vm8 = vcmp.eq.s32.totalorder %v4406_v48, %v4423_v54 }
  0x4f   :  { %6837 = vst [vmem:[#allocation36_spill] sm:$0xff] %v6836_v42  ;;  %vm6480_vm9 = vcmp.eq.s32.totalorder %v4401_v45, %v4403_v47  ;;  %v2976_v34 = vsel %vm142_vm0, 1.0, %v6546_v56  ;;  %v2978_v35 = vsel %vm6481_vm8, 1.0, %v6546_v56  ;;  %vm6482_vm3 = vcmp.eq.s32.totalorder %v4406_v48, %v4403_v47  ;;  %3420 = vmatprep.subr.msk.bf16.mxu0 %vm4716_vm13, %v6486_v3  ;;  %3804 = vmatprep.subr.msk.bf16.mxu1 %vm4716_vm13, %v6486_v3 }
  0x50   :  { %6838 = vst [vmem:[#allocation37_spill] sm:$0xff] %v4720_v32  ;;  %v2975_v38 = vsel %vm6480_vm9, 1.0, %v6546_v56  ;;  %v4748_v46 = vsub.f32 %v2974_v24, %v2974_v24  ;;  %v4750_v57 = vsub.f32 %v2971_v30, %v2971_v30  ;;  %v4752_v63 = vsub.f32 %v2973_v41, %v2973_v41 }
  0x51   :  { %v2977_v12 = vsel %vm6482_vm3, 1.0, %v6546_v56  ;;  %vm6842_vm6 = vcmp.eq.s32.totalorder %v4395_v43, %v4403_v47  ;;  %vm6843_vm9 = vcmp.eq.s32.totalorder %v4398_v44, %v4403_v47  ;;  %v6844_v24 = vmov 0 }
  0x52   :  { %6839 = vst [vmem:[#allocation38_spill] sm:$0xff] %v4748_v46  ;;  %6840 = vst [vmem:[#allocation39_spill] sm:$0xff] %v4750_v57  ;;  %v4774_v30 = vsub.f32 %v2976_v34, %v2976_v34  ;;  %v4776_v41 = vsub.f32 %v2978_v35, %v2978_v35  ;;  %vm6495_vm3 = vcmp.eq.s32.totalorder %v4409_v49, %v4423_v54  ;;  %v4781_v0 = vadd.s32 208, %v4362_v2 }
  0x53   :  { %6841 = vst [vmem:[#allocation40_spill] sm:$0xff] %v4752_v63  ;;  %vm4770_vm8 = vmpackc.low %vm6843_vm9, %vm6842_vm6  ;;  %vm6849_vm13 = vcmp.eq.s32.totalorder %v4406_v48, %v4423_v54  ;;  %v6850_v43 = vmov 0  ;;  %v4793_v44 = vsub.f32 %v2975_v38, %v2975_v38  ;;  %vm6494_vm6 = vcmp.eq.s32.totalorder %v4412_v50, %v4423_v54 }
  0x54   :  { %v6845_v24 = vsel %vm4770_vm8, 4294967295, %v6844_v24  ;;  %6847 = vst [vmem:[#allocation42_spill] sm:$0xff] %v4774_v30  ;;  %6848 = vst [vmem:[#allocation43_spill] sm:$0xff] %v4776_v41  ;;  %v2980_v34 = vsel %vm6495_vm3, 1.0, %v6546_v56  ;;  %v4802_v35 = vadd.s32 216, %v4362_v2  ;;  %v4804_v3 = vsub.f32 %v2977_v12, %v2977_v12 }
  0x55   :  { %6846 = vst [vmem:[#allocation41_spill] sm:$0xff] %v6845_v24  ;;  %vm4789_vm9 = vmpackc.low %vm6849_vm13, %vm142_vm0  ;;  %v2982_v42 = vsel %vm6494_vm6, 1.0, %v6546_v56  ;;  %vm6496_vm13 = vcmp.eq.s32.totalorder %v4409_v49, %v4403_v47  ;;  %vm6499_vm0 = vcmp.eq.s32.totalorder %v4412_v50, %v4403_v47  ;;  %v6855_v38 = vmov 1.0|1.0  }
  0x56   :  { %v6851_v43 = vsel %vm4789_vm9, 4294967295, %v6850_v43  ;;  %6853 = vst [vmem:[#allocation45_spill] sm:$0xff] %v4793_v44  ;;  %6854 = vst [vmem:[#allocation46_spill] sm:$0xff] %v4804_v3  ;;  %3422 = vmatpush1.bf16.msk.msra.mxu0 %vm4770_vm8, %v6855_v38  ;;  %3806 = vmatpush1.bf16.msk.msra.mxu1 %vm4770_vm8, %v6855_v38  ;;  %v4820_v12 = vsub.f32 %v2980_v34, %v2980_v34  ;;  %v2979_v17 = vsel %vm6496_vm13, 1.0, %v6546_v56  ;;  %v2981_v36 = vsel %vm6499_vm0, 1.0, %v6546_v56 }
  0x57   :  { %6852 = vst [vmem:[#allocation44_spill] sm:$0xff] %v6851_v43  ;;  %vm6527_vm6 = vcmp.eq.s32.totalorder %v4415_v51, %v4423_v54  ;;  %3424 = vmatprep.subr.msk.bf16.mxu0 %vm4789_vm9, %v6855_v38  ;;  %3808 = vmatprep.subr.msk.bf16.mxu1 %vm4789_vm9, %v6855_v38  ;;  %vm6857_vm3 = vcmp.eq.s32.totalorder %v4401_v45, %v4403_v47  ;;  %v6859_v34 = vmov 0  ;;  %v6864_v45 = vmov 0 }
  0x58   :  { %6856 = vst [vmem:[#allocation47_spill] sm:$0xff] %v4820_v12  ;;  %vm6858_vm13 = vcmp.eq.s32.totalorder %v4406_v48, %v4403_v47  ;;  %vm6526_vm0 = vcmp.eq.s32.totalorder %v4418_v52, %v4423_v54  ;;  %v2984_v24 = vsel %vm6527_vm6, 1.0, %v6546_v56  ;;  %vm6525_vm9 = vcmp.eq.s32.totalorder %v4415_v51, %v4403_v47 }
  0x59   :  { %vm4844_vm8 = vmpackc.low %vm6858_vm13, %vm6857_vm3  ;;  %vm6524_vm12 = vcmp.eq.s32.totalorder %v4418_v52, %v4403_v47  ;;  %vm6862_vm3 = vcmp.eq.s32.totalorder %v4409_v49, %v4423_v54  ;;  %vm6863_vm13 = vcmp.eq.s32.totalorder %v4412_v50, %v4423_v54  ;;  %v4868_v48 = vsub.f32 %v2982_v42, %v2982_v42 }
  0x5a   :  { %v6860_v34 = vsel %vm4844_vm8, 4294967295, %v6859_v34  ;;  %vm4864_vm1 = vmpackc.low %vm6863_vm13, %vm6862_vm3  ;;  %v2986_v43 = vsel %vm6526_vm0, 1.0, %v6546_v56  ;;  %v2983_v40 = vsel %vm6525_vm9, 1.0, %v6546_v56  ;;  %v2985_v33 = vsel %vm6524_vm12, 1.0, %v6546_v56  ;;  %3426 = vmatpush1.bf16.msk.msra.mxu0 %vm4844_vm8, %v6855_v38  ;;  %3810 = vmatpush1.bf16.msk.msra.mxu1 %vm4844_vm8, %v6855_v38 }
  0x5b   :  { %6861 = vst [vmem:[#allocation48_spill] sm:$0xff] %v6860_v34  ;;  %v6865_v45 = vsel %vm4864_vm1, 4294967295, %v6864_v45  ;;  %6867 = vst [vmem:[#allocation50_spill] sm:$0xff] %v4868_v48  ;;  %v4882_v28 = vsub.f32 %v2979_v17, %v2979_v17  ;;  %v4884_v18 = vsub.f32 %v2981_v36, %v2981_v36  ;;  %v4886_v42 = vsub.f32 %v2984_v24, %v2984_v24 }
  0x5c   :  { %6866 = vst [vmem:[#allocation49_spill] sm:$0xff] %v6865_v45  ;;  %v4888_v15 = vsub.f32 %v2986_v43, %v2986_v43  ;;  %v4896_v5 = vsub.f32 %v2983_v40, %v2983_v40  ;;  %v4898_v61 = vsub.f32 %v2985_v33, %v2985_v33  ;;  %vm154_vm3 = vcmp.eq.s32.totalorder %v4421_v53, %v4423_v54 }
  0x5d   :  { %6868 = vst [vmem:[#allocation51_spill] sm:$0xff] %v4882_v28  ;;  %6869 = vst [vmem:[#allocation52_spill] sm:$0xff] %v4884_v18  ;;  %v4903_v36 = vadd.s32 224, %v4362_v2  ;;  %3428 = vmatprep.subr.msk.bf16.mxu0 %vm4864_vm1, %v6855_v38  ;;  %3812 = vmatprep.subr.msk.bf16.mxu1 %vm4864_vm1, %v6855_v38  ;;  %vm6874_vm13 = vcmp.eq.s32.totalorder %v4409_v49, %v4403_v47  ;;  %vm6875_vm12 = vcmp.eq.s32.totalorder %v4412_v50, %v4403_v47  ;;  %v6876_v33 = vmov 0 }
  0x5e   :  { %6870 = vst [vmem:[#allocation53_spill] sm:$0xff] %v4886_v42  ;;  %6871 = vst [vmem:[#allocation54_spill] sm:$0xff] %v4888_v15  ;;  %vm6532_vm0 = vcmp.eq.s32.totalorder %v4429_v55, %v4423_v54  ;;  %v2988_v40 = vsel %vm154_vm3, 1.0, %v6546_v56  ;;  %vm6533_vm6 = vcmp.eq.s32.totalorder %v4421_v53, %v4403_v47  ;;  %vm6551_vm1 = vcmp.eq.s32.totalorder %v4429_v55, %v4403_v47 }
  0x5f   :  { %6872 = vst [vmem:[#allocation55_spill] sm:$0xff] %v4896_v5  ;;  %6873 = vst [vmem:[#allocation56_spill] sm:$0xff] %v4898_v61  ;;  %v6881_v49 = vmov 0  ;;  %v2990_v50 = vsel %vm6532_vm0, 1.0, %v6546_v56  ;;  %v2987_v17 = vsel %vm6533_vm6, 1.0, %v6546_v56  ;;  %v2989_v24 = vsel %vm6551_vm1, 1.0, %v6546_v56 }
  0x60   :  { %vm4917_vm9 = vmpackc.low %vm6875_vm12, %vm6874_vm13  ;;  %vm6879_vm12 = vcmp.eq.s32.totalorder %v4415_v51, %v4423_v54  ;;  %vm6880_vm13 = vcmp.eq.s32.totalorder %v4418_v52, %v4423_v54  ;;  %vm6543_vm0 = vcmp.eq.s32.totalorder %v4435_v58, %v4403_v47  ;;  %vm6550_vm6 = vcmp.eq.s32.totalorder %v4438_v59, %v4403_v47 }
  0x61   :  { %v6877_v33 = vsel %vm4917_vm9, 4294967295, %v6876_v33  ;;  %vm4937_vm8 = vmpackc.low %vm6880_vm13, %vm6879_vm12  ;;  %vm6542_vm12 = vcmp.eq.s32.totalorder %v4435_v58, %v4423_v54  ;;  %vm6541_vm13 = vcmp.eq.s32.totalorder %v4438_v59, %v4423_v54  ;;  %3430 = vmatpush1.bf16.msk.msra.mxu0 %vm4917_vm9, %v6855_v38  ;;  %3814 = vmatpush1.bf16.msk.msra.mxu1 %vm4917_vm9, %v6855_v38  ;;  %v4971_v45 = vsub.f32 %v2988_v40, %v2988_v40 }
  0x62   :  { %6878 = vst [vmem:[#allocation57_spill] sm:$0xff] %v6877_v33  ;;  %v6882_v49 = vsel %vm4937_vm8, 4294967295, %v6881_v49  ;;  %v2992_v43 = vsel %vm6542_vm12, 1.0, %v6546_v56  ;;  %v2994_v34 = vsel %vm6541_vm13, 1.0, %v6546_v56  ;;  %v2991_v1 = vsel %vm6543_vm0, 1.0, %v6546_v56  ;;  %3432 = vmatprep.subr.msk.bf16.mxu0 %vm4937_vm8, %v6855_v38  ;;  %3816 = vmatprep.subr.msk.bf16.mxu1 %vm4937_vm8, %v6855_v38 }
  0x63   :  { %6883 = vst [vmem:[#allocation58_spill] sm:$0xff] %v6882_v49  ;;  %6884 = vst [vmem:[#allocation59_spill] sm:$0xff] %v4971_v45  ;;  %v2993_v61 = vsel %vm6550_vm6, 1.0, %v6546_v56  ;;  %vm6885_vm13 = vcmp.eq.s32.totalorder %v4415_v51, %v4403_v47  ;;  %vm6886_vm12 = vcmp.eq.s32.totalorder %v4418_v52, %v4403_v47  ;;  %v6887_v40 = vmov 0 }
  0x64   :  { %vm4997_vm0 = vmpackc.low %vm6886_vm12, %vm6885_vm13  ;;  %v5001_v33 = vsub.f32 %v2990_v50, %v2990_v50  ;;  %v5003_v56 = vsub.f32 %v2987_v17, %v2987_v17  ;;  %v5005_v45 = vsub.f32 %v2989_v24, %v2989_v24  ;;  %v5008_v5 = vadd.s32 232, %v4362_v2 }
  0x65   :  { %v6888_v40 = vsel %vm4997_vm0, 4294967295, %v6887_v40  ;;  %vm6893_vm6 = vcmp.eq.s32.totalorder %v4429_v55, %v4423_v54  ;;  %v6894_v51 = vmov 0  ;;  %v5020_v52 = vsub.f32 %v2992_v43, %v2992_v43  ;;  %3434 = vmatpush1.bf16.msk.msra.mxu0 %vm4997_vm0, %v6855_v38  ;;  %3818 = vmatpush1.bf16.msk.msra.mxu1 %vm4997_vm0, %v6855_v38 }
  0x66   :  { %6889 = vst [vmem:[#allocation60_spill] sm:$0xff] %v6888_v40  ;;  %6890 = vst [vmem:[#allocation61_spill] sm:$0xff] %v5001_v33  ;;  %v5022_v50 = vsub.f32 %v2994_v34, %v2994_v34  ;;  %v5024_v17 = vsub.f32 %v2991_v1, %v2991_v1  ;;  %vm6556_vm12 = vcmp.eq.s32.totalorder %v4477_v7, %v4423_v54  ;;  %v6901_v49 = vmov 0.0  }
  0x67   :  { %6891 = vst [vmem:[#allocation62_spill] sm:$0xff] %v5003_v56  ;;  %6892 = vst [vmem:[#allocation63_spill] sm:$0xff] %v5005_v45  ;;  %v5028_v24 = vsub.f32 %v2993_v61, %v2993_v61  ;;  %vm6555_vm13 = vcmp.eq.s32.totalorder %v4480_v8, %v4423_v54  ;;  %v2996_v45 = vsel %vm6556_vm12, 1.0, %v6901_v49  ;;  %v5055_v34 = vadd.s32 240, %v4362_v2 }
  0x68   :  { %vm5016_vm1 = vmpackc.low %vm6893_vm6, %vm154_vm3  ;;  %6897 = vst [vmem:[#allocation65_spill] sm:$0xff] %v5020_v52  ;;  %vm6559_vm6 = vcmp.eq.s32.totalorder %v4477_v7, %v4403_v47  ;;  %v2998_v61 = vsel %vm6555_vm13, 1.0, %v6901_v49  ;;  %vm6902_vm13 = vcmp.eq.s32.totalorder %v4421_v53, %v4403_v47  ;;  %vm6903_vm12 = vcmp.eq.s32.totalorder %v4429_v55, %v4403_v47  ;;  %v309_v52 = vld [vmem:[#allocation4] sm:$0xff] }
  0x69   :  { %v6895_v51 = vsel %vm5016_vm1, 4294967295, %v6894_v51  ;;  %6898 = vst [vmem:[#allocation66_spill] sm:$0xff] %v5022_v50  ;;  %6899 = vst [vmem:[#allocation67_spill] sm:$0xff] %v5024_v17  ;;  %v2995_v1 = vsel %vm6559_vm6, 1.0, %v6901_v49  ;;  %3436 = vmatprep.subr.msk.bf16.mxu0 %vm5016_vm1, %v6855_v38  ;;  %3820 = vmatprep.subr.msk.bf16.mxu1 %vm5016_vm1, %v6855_v38  ;;  %v6904_v43 = vmov 0  ;;  %v5073_v40 = vsub.f32 %v2996_v45, %v2996_v45 }
  0x6a   :  { %6896 = vst [vmem:[#allocation64_spill] sm:$0xff] %v6895_v51  ;;  %6900 = vst [vmem:[#allocation68_spill] sm:$0xff] %v5028_v24  ;;  %vm6908_vm6 = vcmp.eq.s32.totalorder %v4480_v8, %v4403_v47  ;;  %vm6582_vm1 = vcmp.eq.s32.totalorder %v4555_v25, %v4423_v54  ;;  %vm6581_vm0 = vcmp.eq.s32.totalorder %v4678_v16, %v4423_v54  ;;  %v6911_v53 = vmov 0 }
  0x6b   :  { %vm5069_vm3 = vmpackc.low %vm6903_vm12, %vm6902_vm13  ;;  %6907 = vst [vmem:[#allocation70_spill] sm:$0xff] %v5073_v40  ;;  %v2997_v24 = vsel %vm6908_vm6, 1.0, %v6901_v49  ;;  %vm6909_vm8 = vcmp.eq.s32.totalorder %v4435_v58, %v4423_v54  ;;  %vm6910_vm12 = vcmp.eq.s32.totalorder %v4438_v59, %v4423_v54  ;;  %v3000_v55 = vsel %vm6582_vm1, 1.0, %v6901_v49 }
  0x6c   :  { %v6905_v43 = vsel %vm5069_vm3, 4294967295, %v6904_v43  ;;  %vm5089_vm13 = vmpackc.low %vm6910_vm12, %vm6909_vm8  ;;  %v3002_v45 = vsel %vm6581_vm0, 1.0, %v6901_v49  ;;  %vm6578_vm6 = vcmp.eq.s32.totalorder %v4555_v25, %v4403_v47  ;;  %vm6577_vm9 = vcmp.eq.s32.totalorder %v4678_v16, %v4403_v47  ;;  %3438 = vmatpush1.bf16.msk.msra.mxu0 %vm5069_vm3, %v6855_v38  ;;  %3822 = vmatpush1.bf16.msk.msra.mxu1 %vm5069_vm3, %v6855_v38 }
  0x6d   :  { %6906 = vst [vmem:[#allocation69_spill] sm:$0xff] %v6905_v43  ;;  %v6912_v53 = vsel %vm5089_vm13, 4294967295, %v6911_v53  ;;  %v5105_v51 = vsub.f32 %v2998_v61, %v2998_v61  ;;  %v5107_v40 = vsub.f32 %v2995_v1, %v2995_v1  ;;  %v2999_v17 = vsel %vm6578_vm6, 1.0, %v6901_v49  ;;  %3440 = vmatprep.subr.msk.bf16.mxu0 %vm5089_vm13, %v6855_v38  ;;  %3824 = vmatprep.subr.msk.bf16.mxu1 %vm5089_vm13, %v6855_v38 }
  0x6e   :  { %6913 = vst [vmem:[#allocation71_spill] sm:$0xff] %v6912_v53  ;;  %v3001_v50 = vsel %vm6577_vm9, 1.0, %v6901_v49  ;;  %v5123_v61 = vsub.f32 %v2997_v24, %v2997_v24  ;;  %v5125_v1 = vsub.f32 %v3000_v55, %v3000_v55  ;;  %vm6919_vm8 = vcmp.eq.s32.totalorder %v4435_v58, %v4403_v47 }
  0x6f   :  { %6914 = vst [vmem:[#allocation72_spill] sm:$0xff] %v5105_v51  ;;  %6915 = vst [vmem:[#allocation73_spill] sm:$0xff] %v5107_v40  ;;  %v5127_v40 = vsub.f32 %v3002_v45, %v3002_v45  ;;  %v5130_v51 = vadd.s32 248, %v4362_v2  ;;  %vm6920_vm12 = vcmp.eq.s32.totalorder %v4438_v59, %v4403_v47  ;;  %v6921_v24 = vmov 0 }
  0x70   :  { %6916 = vst [vmem:[#allocation74_spill] sm:$0xff] %v5123_v61  ;;  %6917 = vst [vmem:[#allocation75_spill] sm:$0xff] %v5125_v1  ;;  %v5148_v55 = vsub.f32 %v2999_v17, %v2999_v17  ;;  %v5150_v45 = vsub.f32 %v3001_v50, %v3001_v50  ;;  %vm6594_vm6 = vcmp.eq.s32.totalorder %v4781_v0, %v4423_v54  ;;  %v5154_v43 = vand.u32 4294901760, %v309_v52 }
  0x71   :  { %6918 = vst [vmem:[#allocation76_spill] sm:$0xff] %v5127_v40  ;;  %vm5144_vm9 = vmpackc.low %vm6920_vm12, %vm6919_vm8  ;;  %vm6927_vm0 = vcmp.eq.s32.totalorder %v4477_v7, %v4423_v54  ;;  %vm6928_vm1 = vcmp.eq.s32.totalorder %v4480_v8, %v4423_v54  ;;  %v6929_v58 = vmov 0  ;;  %vm6592_vm8 = vcmp.eq.s32.totalorder %v4802_v35, %v4423_v54 }
  0x72   :  { %v6922_v24 = vsel %vm5144_vm9, 4294967295, %v6921_v24  ;;  %6924 = vst [vmem:[#allocation78_spill] sm:$0xff] %v5148_v55  ;;  %6925 = vst [vmem:[#allocation79_spill] sm:$0xff] %v5150_v45  ;;  %v3004_v59 = vsel %vm6594_vm6, 1.0, %v6901_v49  ;;  %vm6591_vm12 = vcmp.eq.s32.totalorder %v4781_v0, %v4403_v47  ;;  %vm6590_vm3 = vcmp.eq.s32.totalorder %v4802_v35, %v4403_v47  ;;  %3442 = vmatpush1.bf16.msk.msra.mxu0 %vm5144_vm9, %v6855_v38 }
  0x73   :  { %6923 = vst [vmem:[#allocation77_spill] sm:$0xff] %v6922_v24  ;;  %6926 = vst [vmem:[#allocation80_spill] sm:$0xff] %v5154_v43  ;;  %v3006_v50 = vsel %vm6592_vm8, 1.0, %v6901_v49  ;;  %v3003_v17 = vsel %vm6591_vm12, 1.0, %v6901_v49  ;;  %v3005_v53 = vsel %vm6590_vm3, 1.0, %v6901_v49  ;;  %3826 = vmatpush1.bf16.msk.msra.mxu1 %vm5144_vm9, %v6855_v38  ;;  %vm6611_vm3 = vcmp.eq.s32.totalorder %v4903_v36, %v4403_v47 }
  0x74   :  { %vm5162_vm13 = vmpackc.low %vm6928_vm1, %vm6927_vm0  ;;  %vm6593_vm1 = vcmp.eq.s32.totalorder %v4903_v36, %v4423_v54  ;;  %vm6612_vm0 = vcmp.eq.s32.totalorder %v5008_v5, %v4423_v54  ;;  %vm6606_vm12 = vcmp.eq.s32.totalorder %v5008_v5, %v4403_v47  ;;  %vm6932_vm8 = vcmp.eq.s32.totalorder %v4477_v7, %v4403_v47 }
  0x75   :  { %v6930_v58 = vsel %vm5162_vm13, 4294967295, %v6929_v58  ;;  %v3008_v45 = vsel %vm6593_vm1, 1.0, %v6901_v49  ;;  %3444 = vmatprep.subr.msk.bf16.mxu0 %vm5162_vm13, %v6855_v38  ;;  %3828 = vmatprep.subr.msk.bf16.mxu1 %vm5162_vm13, %v6855_v38  ;;  %vm6933_vm1 = vcmp.eq.s32.totalorder %v4480_v8, %v4403_v47  ;;  %v6934_v24 = vmov 0 }
  0x76   :  { %6931 = vst [vmem:[#allocation81_spill] sm:$0xff] %v6930_v58  ;;  %vm5218_vm6 = vmpackc.low %vm6933_vm1, %vm6932_vm8  ;;  %v3010_v55 = vsel %vm6612_vm0, 1.0, %v6901_v49  ;;  %v3007_v58 = vsel %vm6611_vm3, 1.0, %v6901_v49  ;;  %v3009_v7 = vsel %vm6606_vm12, 1.0, %v6901_v49  ;;  %vm6937_vm8 = vcmp.eq.s32.totalorder %v4555_v25, %v4423_v54 }
  0x77   :  { %v6935_v24 = vsel %vm5218_vm6, 4294967295, %v6934_v24  ;;  %vm6938_vm1 = vcmp.eq.s32.totalorder %v4678_v16, %v4423_v54  ;;  %v6939_v40 = vmov 0  ;;  %v5245_v1 = vsub.f32 %v3004_v59, %v3004_v59  ;;  %3446 = vmatpush1.bf16.msk.msra.mxu0 %vm5218_vm6, %v6855_v38  ;;  %3830 = vmatpush1.bf16.msk.msra.mxu1 %vm5218_vm6, %v6855_v38 }
  0x78   :  { %6936 = vst [vmem:[#allocation82_spill] sm:$0xff] %v6935_v24  ;;  %vm5241_vm13 = vmpackc.low %vm6938_vm1, %vm6937_vm8  ;;  %v5247_v61 = vsub.f32 %v3006_v50, %v3006_v50  ;;  %v5249_v56 = vsub.f32 %v3003_v17, %v3003_v17  ;;  %vm6610_vm12 = vcmp.eq.s32.totalorder %v5055_v34, %v4423_v54  ;;  %v5253_v8 = vsub.f32 %v3005_v53, %v3005_v53  ;;  %v1602_v50 = vld [vmem:[#allocation7] sm:$0x3] }
  0x79   :  { %v6940_v40 = vsel %vm5241_vm13, 4294967295, %v6939_v40  ;;  %6942 = vst [vmem:[#allocation84_spill] sm:$0xff] %v5245_v1  ;;  %v5255_v33 = vsub.f32 %v3008_v45, %v3008_v45  ;;  %v5257_v15 = vsub.f32 %v3010_v55, %v3010_v55  ;;  %v3012_v42 = vsel %vm6610_vm12, 1.0, %v6901_v49  ;;  %3448 = vmatprep.subr.msk.bf16.mxu0 %vm5241_vm13, %v6855_v38  ;;  %3832 = vmatprep.subr.msk.bf16.mxu1 %vm5241_vm13, %v6855_v38 }
  0x7a   :  { %6941 = vst [vmem:[#allocation83_spill] sm:$0xff] %v6940_v40  ;;  %6943 = vst [vmem:[#allocation85_spill] sm:$0xff] %v5247_v61  ;;  %v5269_v59 = vsub.f32 %v3007_v58, %v3007_v58  ;;  %v5271_v53 = vsub.f32 %v3009_v7, %v3009_v7  ;;  %vm6615_vm8 = vcmp.eq.s32.totalorder %v5130_v51, %v4423_v54  ;;  %v6952_v55 = vmov 0 }
  0x7b   :  { %6944 = vst [vmem:[#allocation86_spill] sm:$0xff] %v5249_v56  ;;  %6945 = vst [vmem:[#allocation87_spill] sm:$0xff] %v5253_v8  ;;  %vm6950_vm1 = vcmp.eq.s32.totalorder %v4555_v25, %v4403_v47  ;;  %vm6951_vm12 = vcmp.eq.s32.totalorder %v4678_v16, %v4403_v47  ;;  %v5295_v45 = vsel %vm6615_vm8, 1.0, %v6901_v49  ;;  %v5297_v58 = vsub.f32 %v3012_v42, %v3012_v42 }
  0x7c   :  { %6946 = vst [vmem:[#allocation88_spill] sm:$0xff] %v5255_v33  ;;  %6947 = vst [vmem:[#allocation89_spill] sm:$0xff] %v5257_v15  ;;  %v6958_v16 = vmov 0  ;;  %v311_v42 = vcombine.high %v309_v52, %v309_v52  ;;  %v6961_v17 = vand.u32 4294901760, %v4482_v9  ;;  %v1606_v25 = vsub.s32 0, %v4362_v2 }
  0x7d   :  { %6948 = vst [vmem:[#allocation90_spill] sm:$0xff] %v5269_v59  ;;  %6949 = vst [vmem:[#allocation91_spill] sm:$0xff] %v5271_v53  ;;  %v1610_v40 = vsub.s32 1, %v4362_v2  ;;  %v6962_v24 = vand.u32 4294901760, %v4494_v13  ;;  %v5323_v53 = vsub.f32 %v309_v52, %v5154_v43  ;;  %v6627_v59 = vand.u32 4294901760, %v4466_v4 }
  0x7e   :  { %vm5287_vm3 = vmpackc.low %vm6951_vm12, %vm6950_vm1  ;;  %6955 = vst [vmem:[#allocation93_spill] sm:$0xff] %v5297_v58  ;;  %vm6956_vm12 = vcmp.eq.s32.totalorder %v4781_v0, %v4423_v54  ;;  %vm6957_vm1 = vcmp.eq.s32.totalorder %v4802_v35, %v4423_v54  ;;  %v461_v7 = vsub.f32 %v4482_v9, %v6961_v17  ;;  %v6630_v15 = vand.u32 4294901760, %v4487_v10 }
  0x7f   :  { %v6953_v55 = vsel %vm5287_vm3, 4294967295, %v6952_v55  ;;  %vm5308_vm13 = vmpackc.low %vm6957_vm1, %vm6956_vm12  ;;  %v473_v58 = vsub.f32 %v4494_v13, %v6962_v24  ;;  %6963 = vst [vmem:[#allocation95_spill] sm:$0xff] %v5323_v53  ;;  %3450 = vmatpush1.bf16.msk.msra.mxu0 %vm5287_vm3, %v6855_v38  ;;  %3834 = vmatpush1.bf16.msk.msra.mxu1 %vm5287_vm3, %v6855_v38  ;;  %v5333_v17 = vand.u32 4294901760, %v311_v42  ;;  %v1607_v9 = vrot.slane %v1602_v50, %v1606_v25 }
  0x80   :  { %6954 = vst [vmem:[#allocation92_spill] sm:$0xff] %v6953_v55  ;;  %v6959_v16 = vsel %vm5308_vm13, 4294967295, %v6958_v16  ;;  %v462_v2 = vand.u32 4294901760, %v461_v7  ;;  %v1611_v24 = vrot.slane %v1602_v50, %v1610_v40  ;;  %3452 = vmatprep.subr.msk.bf16.mxu0 %vm5308_vm13, %v6855_v38  ;;  %3836 = vmatprep.subr.msk.bf16.mxu1 %vm5308_vm13, %v6855_v38  ;;  %vm6965_vm12 = vcmp.eq.s32.totalorder %v4781_v0, %v4403_v47 }
  0x81   :  { %6960 = vst [vmem:[#allocation94_spill] sm:$0xff] %v6959_v16  ;;  %6964 = vst [vmem:[#allocation96_spill] sm:$0xff] %v5333_v17  ;;  %vm6966_vm1 = vcmp.eq.s32.totalorder %v4802_v35, %v4403_v47  ;;  %v6967_v52 = vmov 0  ;;  %v474_v25 = vand.u32 4294901760, %v473_v58  ;;  %v467_v50 = vsub.f32 %v4466_v4, %v6627_v59 }
  0x82   :  { %vm5347_vm8 = vmpackc.low %vm6966_vm1, %vm6965_vm12  ;;  %v479_v7 = vsub.f32 %v4487_v10, %v6630_v15  ;;  %vm6970_vm0 = vcmp.eq.s32.totalorder %v4903_v36, %v4423_v54  ;;  %vm6971_vm12 = vcmp.eq.s32.totalorder %v5008_v5, %v4423_v54  ;;  %v6972_v0 = vmov 0 }
  0x83   :  { %v6968_v52 = vsel %vm5347_vm8, 4294967295, %v6967_v52  ;;  %vm5364_vm1 = vmpackc.low %vm6971_vm12, %vm6970_vm0  ;;  %v5369_v35 = vsub.f32 %v311_v42, %v5333_v17  ;;  %v5371_v58 = vand.u32 4294901760, %v1611_v24  ;;  %v5373_v59 = vand.u32 4294901760, %v1607_v9  ;;  %3454 = vmatpush1.bf16.msk.msra.mxu0 %vm5347_vm8, %v6855_v38  ;;  %3838 = vmatpush1.bf16.msk.msra.mxu1 %vm5347_vm8, %v6855_v38 }
  0x84   :  { %6969 = vst [vmem:[#allocation97_spill] sm:$0xff] %v6968_v52  ;;  %v6973_v0 = vsel %vm5364_vm1, 4294967295, %v6972_v0  ;;  %vm6978_vm13 = vcmp.eq.s32.totalorder %v5055_v34, %v4403_v47  ;;  %v3463_v16 = vpack.c.bf16 %v474_v25, %v462_v2  ;;  %v6979_v55 = vand.u32 4294901760, %v5323_v53  ;;  %3456 = vmatprep.subr.msk.bf16.mxu0 %vm5364_vm1, %v6855_v38  ;;  %3840 = vmatprep.subr.msk.bf16.mxu1 %vm5364_vm1, %v6855_v38 }
  0x85   :  { %6974 = vst [vmem:[#allocation98_spill] sm:$0xff] %v6973_v0  ;;  %6975 = vst [vmem:[#allocation99_spill] sm:$0xff] %v5369_v35  ;;  %v5380_v15 = vsel %vm6978_vm13, 1.0, %v6901_v49  ;;  %v468_v42 = vand.u32 4294901760, %v467_v50  ;;  %v5395_v13 = vsub.f32 %v1611_v24, %v5371_v58  ;;  %v5398_v2 = vsub.f32 %v1607_v9, %v5373_v59 }
  0x86   :  { %6976 = vst [vmem:[#allocation100_spill] sm:$0xff] %v5371_v58  ;;  %6977 = vst [vmem:[#allocation101_spill] sm:$0xff] %v5373_v59  ;;  %v5385_v43 = vsub.f32 %v5323_v53, %v6979_v55  ;;  %v6982_v55 = vand.u32 4294901760, %v4530_v19  ;;  %vm6983_vm13 = vcmp.eq.s32.totalorder %v4903_v36, %v4403_v47  ;;  %vm6984_vm0 = vcmp.eq.s32.totalorder %v5008_v5, %v4403_v47 }
  0x87   :  { %6980 = vst [vmem:[#allocation102_spill] sm:$0xff] %v5395_v13  ;;  %6981 = vst [vmem:[#allocation103_spill] sm:$0xff] %v5398_v2  ;;  %v6985_v9 = vmov 0  ;;  %v480_v50 = vand.u32 4294901760, %v479_v7  ;;  %vm6988_vm1 = vcmp.eq.s32.totalorder %v5055_v34, %v4423_v54  ;;  %vm6989_vm8 = vcmp.eq.s32.totalorder %v5130_v51, %v4423_v54 }
  0x88   :  { %v485_v25 = vsub.f32 %v4530_v19, %v6982_v55  ;;  %vm5415_vm12 = vmpackc.low %vm6984_vm0, %vm6983_vm13  ;;  %v451_v24 = vand.u32 4294901760, %v5385_v43  ;;  %v6990_v36 = vmov 0  ;;  %v6993_v5 = vand.u32 4294901760, %v5369_v35 }
  0x89   :  { %v6986_v9 = vsel %vm5415_vm12, 4294967295, %v6985_v9  ;;  %vm5428_vm3 = vmpackc.low %vm6989_vm8, %vm6988_vm1  ;;  %v6656_v43 = vand.u32 4294901760, %v5395_v13  ;;  %v6655_v7 = vand.u32 4294901760, %v5398_v2  ;;  %v6994_v40 = vand.u32 4294901760, %v4532_v20  ;;  %3458 = vmatpush1.bf16.msk.msra.mxu0 %vm5415_vm12, %v6855_v38  ;;  %3842 = vmatpush1.bf16.msk.msra.mxu1 %vm5415_vm12, %v6855_v38 }
  0x8a   :  { %6987 = vst [vmem:[#allocation104_spill] sm:$0xff] %v6986_v9  ;;  %v6991_v36 = vsel %vm5428_vm3, 4294967295, %v6990_v36  ;;  %v444_v0 = vsub.f32 %v5369_v35, %v6993_v5  ;;  %v486_v55 = vand.u32 4294901760, %v485_v25  ;;  %v6995_v53 = vand.u32 4294901760, %v4534_v21  ;;  %3460 = vmatprep.subr.msk.bf16.mxu0 %vm5428_vm3, %v6855_v38  ;;  %3844 = vmatprep.subr.msk.bf16.mxu1 %vm5428_vm3, %v6855_v38 }
  0x8b   :  { %6992 = vst [vmem:[#allocation105_spill] sm:$0xff] %v6991_v36  ;;  %v497_v52 = vsub.f32 %v4532_v20, %v6994_v40  ;;  %v6683_v59 = vand.u32 4294901760, %v4543_v23  ;;  %v6669_v19 = vand.u32 4294901760, %v4560_v26  ;;  %v1745_v40 = vsub.f32 %v5395_v13, %v6656_v43 }
  0x8c   :  { %v491_v54 = vsub.f32 %v4534_v21, %v6995_v53  ;;  %v445_v25 = vand.u32 4294901760, %v444_v0  ;;  %v1751_v53 = vsub.f32 %v5398_v2, %v6655_v7  ;;  %vm6996_vm8 = vcmp.eq.s32.totalorder %v5055_v34, %v4403_v47 }
  0x8d   :  { %vm6997_vm1 = vcmp.eq.s32.totalorder %v5130_v51, %v4403_v47  ;;  %v6998_v0 = vmov 0  ;;  %v3465_v7 = vpack.c.bf16 %v480_v50, %v468_v42  ;;  %v498_v43 = vand.u32 4294901760, %v497_v52  ;;  %v7004_v51 = vld [vmem:[#allocation53_spill] sm:$0xff] }
  0x8e   :  { %vm5470_vm13 = vmpackc.low %vm6997_vm1, %vm6996_vm8  ;;  %v503_v5 = vsub.f32 %v4543_v23, %v6683_v59  ;;  %v509_v36 = vsub.f32 %v4560_v26, %v6669_v19  ;;  %446 = vmatprep.mubr.f32.mxu0 %v445_v25  ;;  %v1746_v9 = vand.u32 4294901760, %v1745_v40  ;;  %v492_v34 = vand.u32 4294901760, %v491_v54 }
  0x8f   :  { %v6999_v0 = vsel %vm5470_vm13, 4294967295, %v6998_v0  ;;  %v7001_v2 = vand.u32 4294901760, %v4562_v27  ;;  %v6670_v35 = vand.u32 4294901760, %v4580_v31  ;;  %v1752_v21 = vand.u32 4294901760, %v1751_v53  ;;  %3462 = vmatpush1.bf16.msk.msra.mxu0 %vm5470_vm13, %v6855_v38  ;;  %3846 = vmatpush1.bf16.msk.msra.mxu1 %vm5470_vm13, %v6855_v38  ;;  %vm7003_vm0 = vmmov %vm6997_vm1 }
  0x90   :  { %7000 = vst [vmem:[#allocation106_spill] sm:$0xff] %v6999_v0  ;;  %v3467_v42 = vpack.c.bf16 %v498_v43, %v486_v55  ;;  %v504_v52 = vand.u32 4294901760, %v503_v5  ;;  %v6671_v50 = vand.u32 4294901760, %v4591_v29  ;;  %v510_v54 = vand.u32 4294901760, %v509_v36  ;;  %3464 = vmatprep.subr.bf16.mxu0 %v3463_v16  ;;  %1747 = vmatprep.mubr.f32.mxu1 %v1746_v9 }
  0x91   :  { %v521_v13 = vsub.f32 %v4562_v27, %v7001_v2  ;;  %v515_v2 = vsub.f32 %v4580_v31, %v6670_v35  ;;  %v6672_v25 = vand.u32 4294901760, %v4606_v37  ;;  %v6673_v55 = vand.u32 4294901760, %v4619_v39  ;;  %3848 = vmatprep.subr.bf16.mxu1 %v3463_v16 }
  0x92   :  { %v527_v40 = vsub.f32 %v4591_v29, %v6671_v50  ;;  %v6674_v53 = vand.u32 4294901760, %v4638_v60  ;;  %v6675_v5 = vand.u32 4294901760, %v4640_v62  ;;  %v3469_v36 = vpack.c.bf16 %v504_v52, %v492_v34  ;;  %452 = vmatmul.mubr.f32.vlgmr.msra.gmra.mrb[0].mxu0 %v451_v24  ;;  %1753 = vmatmul.mubr.f32.vlgmr.msra.gmra.mrb[0].mxu1 %v1752_v21 }
  0x93   :  { %v522_v43 = vand.u32 4294901760, %v521_v13  ;;  %v516_v19 = vand.u32 4294901760, %v515_v2  ;;  %v533_v35 = vsub.f32 %v4606_v37, %v6672_v25  ;;  %v545_v9 = vsub.f32 %v4619_v39, %v6673_v55  ;;  %3466 = vmatpush1.bf16.msra.mxu0 %v3465_v7  ;;  %3850 = vmatpush1.bf16.msra.mxu1 %v3465_v7 }
  0x94   :  { %v528_v13 = vand.u32 4294901760, %v527_v40  ;;  %v539_v50 = vsub.f32 %v4638_v60, %v6674_v53  ;;  %v551_v16 = vsub.f32 %v4640_v62, %v6675_v5  ;;  %v6681_v34 = vand.u32 4294901760, %v4655_v6  ;;  %3468 = vmatprep.subr.bf16.mxu0 %v3467_v42  ;;  %3852 = vmatprep.subr.bf16.mxu1 %v3467_v42 }
  0x95   :  { %v534_v52 = vand.u32 4294901760, %v533_v35  ;;  %v546_v2 = vand.u32 4294901760, %v545_v9  ;;  %v6679_v25 = vand.u32 4294901760, %v4657_v11  ;;  %v6676_v24 = vand.u32 4294901760, %v4671_v14  ;;  %843 = vmatprep.mubr.f32.mxu0 %v5333_v17  ;;  %2144 = vmatprep.mubr.f32.mxu1 %v5371_v58 }
  0x96   :  { %v3471_v21 = vpack.c.bf16 %v522_v43, %v510_v54  ;;  %v3473_v40 = vpack.c.bf16 %v528_v13, %v516_v19  ;;  %v540_v55 = vand.u32 4294901760, %v539_v50  ;;  %v557_v53 = vsub.f32 %v4655_v6, %v6681_v34 }
  0x97   :  { %v552_v5 = vand.u32 4294901760, %v551_v16  ;;  %v569_v7 = vsub.f32 %v4657_v11, %v6679_v25  ;;  %v563_v35 = vsub.f32 %v4671_v14, %v6676_v24  ;;  %v6677_v9 = vand.u32 4294901760, %v4696_v22  ;;  %3470 = vmatpush1.bf16.msra.mxu0 %v3469_v36  ;;  %3854 = vmatpush1.bf16.msra.mxu1 %v3469_v36 }
  0x98   :  { %v3475_v19 = vpack.c.bf16 %v546_v2, %v534_v52  ;;  %v558_v42 = vand.u32 4294901760, %v557_v53  ;;  %v6678_v50 = vand.u32 4294901760, %v4720_v32  ;;  %v6680_v54 = vand.u32 4294901760, %v4748_v46  ;;  %3472 = vmatprep.subr.bf16.mxu0 %v3471_v21  ;;  %3856 = vmatprep.subr.bf16.mxu1 %v3471_v21 }
  0x99   :  { %v570_v43 = vand.u32 4294901760, %v569_v7  ;;  %v564_v13 = vand.u32 4294901760, %v563_v35  ;;  %v575_v16 = vsub.f32 %v4696_v22, %v6677_v9  ;;  %v6682_v24 = vand.u32 4294901760, %v4750_v57 }
  0x9a   :  { %v581_v53 = vsub.f32 %v4720_v32, %v6678_v50  ;;  %v593_v52 = vsub.f32 %v4748_v46, %v6680_v54  ;;  %v6684_v36 = vand.u32 4294901760, %v4752_v63  ;;  %v6685_v2 = vand.u32 4294901760, %v4774_v30 }
  0x9b   :  { %v5544_v7 = vsub.f32 %v5295_v45, %v5295_v45  ;;  %v576_v35 = vand.u32 4294901760, %v575_v16  ;;  %v587_v21 = vsub.f32 %v4750_v57, %v6682_v24  ;;  %v6686_v9 = vand.u32 4294901760, %v4776_v41  ;;  %3474 = vmatpush1.bf16.msra.mxu0 %v3473_v40  ;;  %3858 = vmatpush1.bf16.msra.mxu1 %v3473_v40 }
  0x9c   :  { %v3477_v50 = vpack.c.bf16 %v552_v5, %v540_v55  ;;  %v3479_v25 = vpack.c.bf16 %v570_v43, %v558_v42  ;;  %v599_v54 = vsub.f32 %v4752_v63, %v6684_v36  ;;  %v605_v34 = vsub.f32 %v4774_v30, %v6685_v2  ;;  %3476 = vmatprep.subr.bf16.mxu0 %v3475_v19 }
  0x9d   :  { %7002 = vst [vmem:[#allocation107_spill] sm:$0xff] %v5544_v7  ;;  %v582_v45 = vand.u32 4294901760, %v581_v53  ;;  %v594_v16 = vand.u32 4294901760, %v593_v52  ;;  %v617_v24 = vsub.f32 %v4776_v41, %v6686_v9  ;;  %v6689_v59 = vand.u32 4294901760, %v4793_v44  ;;  %3860 = vmatprep.subr.bf16.mxu1 %v3475_v19 }
  0x9e   :  { %v3481_v55 = vpack.c.bf16 %v576_v35, %v564_v13  ;;  %v588_v5 = vand.u32 4294901760, %v587_v21  ;;  %v600_v42 = vand.u32 4294901760, %v599_v54  ;;  %v6688_v43 = vand.u32 4294901760, %v4804_v3 }
  0x9f   :  { %v606_v36 = vand.u32 4294901760, %v605_v34  ;;  %v611_v40 = vsub.f32 %v4793_v44, %v6689_v59  ;;  %v6687_v53 = vand.u32 4294901760, %v4820_v12  ;;  %v6692_v52 = vand.u32 4294901760, %v4868_v48  ;;  %3478 = vmatpush1.bf16.msra.mxu0 %v3477_v50  ;;  %3862 = vmatpush1.bf16.msra.mxu1 %v3477_v50  ;;  %v7006_v59 = vld [vmem:[#allocation55_spill] sm:$0xff] }
  0xa0   :  { %v618_v2 = vand.u32 4294901760, %v617_v24  ;;  %v623_v9 = vsub.f32 %v4804_v3, %v6688_v43  ;;  %v6695_v19 = vand.u32 4294901760, %v4882_v28  ;;  %v6696_v54 = vand.u32 4294901760, %v4884_v18  ;;  %3480 = vmatprep.subr.bf16.mxu0 %v3479_v25  ;;  %3864 = vmatprep.subr.bf16.mxu1 %v3479_v25 }
  0xa1   :  { %v5575_v34 = vsel %vm7003_vm0, 1.0, %v6901_v49  ;;  %v3483_v13 = vpack.c.bf16 %v594_v16, %v582_v45  ;;  %v629_v24 = vsub.f32 %v4820_v12, %v6687_v53  ;;  %v641_v35 = vsub.f32 %v4868_v48, %v6692_v52  ;;  %v7005_v53 = vld [vmem:[#allocation54_spill] sm:$0xff] }
  0xa2   :  { %v3485_v21 = vpack.c.bf16 %v600_v42, %v588_v5  ;;  %v635_v47 = vsub.f32 %v4882_v28, %v6695_v19  ;;  %v647_v49 = vsub.f32 %v4884_v18, %v6696_v54  ;;  %v6697_v50 = vand.u32 4294901760, %v7004_v51  ;;  %v7025_v18 = vld [vmem:[#allocation78_spill] sm:$0xff] }
  0xa3   :  { %v612_v45 = vand.u32 4294901760, %v611_v40  ;;  %v624_v16 = vand.u32 4294901760, %v623_v9  ;;  %v6700_v43 = vand.u32 4294901760, %v7005_v53  ;;  %v3487_v52 = vpack.c.bf16 %v618_v2, %v606_v36  ;;  %3482 = vmatpush1.bf16.msra.mxu0 %v3481_v55  ;;  %3866 = vmatpush1.bf16.msra.mxu1 %v3481_v55  ;;  %v7007_v9 = vld [vmem:[#allocation56_spill] sm:$0xff] }
  0xa4   :  { %v630_v17 = vand.u32 4294901760, %v629_v24  ;;  %v642_v25 = vand.u32 4294901760, %v641_v35  ;;  %v653_v5 = vsub.f32 %v7004_v51, %v6697_v50  ;;  %v636_v42 = vand.u32 4294901760, %v635_v47  ;;  %3484 = vmatprep.subr.bf16.mxu0 %v3483_v13  ;;  %3868 = vmatprep.subr.bf16.mxu1 %v3483_v13  ;;  %v7009_v24 = vld [vmem:[#allocation59_spill] sm:$0xff]  ;;  %v7010_v50 = vld [vmem:[#allocation61_spill] sm:$0xff] }
  0xa5   :  { %v648_v19 = vand.u32 4294901760, %v647_v49  ;;  %v665_v40 = vsub.f32 %v7005_v53, %v6700_v43  ;;  %v6705_v54 = vand.u32 4294901760, %v7007_v9  ;;  %v7008_v36 = vand.u32 4294901760, %v7006_v59  ;;  %v7011_v43 = vld [vmem:[#allocation62_spill] sm:$0xff]  ;;  %v7013_v53 = vld [vmem:[#allocation65_spill] sm:$0xff] }
  0xa6   :  { %v654_v58 = vand.u32 4294901760, %v653_v5  ;;  %v6707_v35 = vand.u32 4294901760, %v7009_v24  ;;  %v6709_v0 = vand.u32 4294901760, %v7010_v50  ;;  %v3489_v55 = vpack.c.bf16 %v624_v16, %v612_v45 }
  0xa7   :  { %v659_v2 = vsub.f32 %v7006_v59, %v7008_v36  ;;  %v666_v47 = vand.u32 4294901760, %v665_v40  ;;  %v671_v49 = vsub.f32 %v7007_v9, %v6705_v54  ;;  %v6710_v38 = vand.u32 4294901760, %v7011_v43  ;;  %v7012_v36 = vld [vmem:[#allocation63_spill] sm:$0xff]  ;;  %3486 = vmatpush1.bf16.msra.mxu0 %v3485_v21  ;;  %3870 = vmatpush1.bf16.msra.mxu1 %v3485_v21  ;;  %v7014_v54 = vld [vmem:[#allocation66_spill] sm:$0xff] }
  0xa8   :  { %v677_v13 = vsub.f32 %v7009_v24, %v6707_v35  ;;  %v689_v5 = vsub.f32 %v7010_v50, %v6709_v0  ;;  %v6712_v59 = vand.u32 4294901760, %v7012_v36  ;;  %v6713_v51 = vand.u32 4294901760, %v7013_v53  ;;  %3488 = vmatprep.subr.bf16.mxu0 %v3487_v52  ;;  %3872 = vmatprep.subr.bf16.mxu1 %v3487_v52 }
  0xa9   :  { %v3491_v45 = vpack.c.bf16 %v642_v25, %v630_v17  ;;  %v3493_v16 = vpack.c.bf16 %v648_v19, %v636_v42  ;;  %v683_v40 = vsub.f32 %v7011_v43, %v6710_v38  ;;  %v6716_v9 = vand.u32 4294901760, %v7014_v54  ;;  %v7015_v42 = vld [vmem:[#allocation67_spill] sm:$0xff] }
  0xaa   :  { %v3495_v35 = vpack.c.bf16 %v666_v47, %v654_v58  ;;  %v660_v24 = vand.u32 4294901760, %v659_v2  ;;  %v695_v0 = vsub.f32 %v7012_v36, %v6712_v59  ;;  %v701_v21 = vsub.f32 %v7013_v53, %v6713_v51  ;;  %v7016_v2 = vld [vmem:[#allocation68_spill] sm:$0xff] }
  0xab   :  { %v672_v17 = vand.u32 4294901760, %v671_v49  ;;  %v678_v19 = vand.u32 4294901760, %v677_v13  ;;  %v713_v25 = vsub.f32 %v7014_v54, %v6716_v9  ;;  %v6718_v38 = vand.u32 4294901760, %v7015_v42  ;;  %3490 = vmatpush1.bf16.msra.mxu0 %v3489_v55  ;;  %3874 = vmatpush1.bf16.msra.mxu1 %v3489_v55  ;;  %v7017_v49 = vld [vmem:[#allocation70_spill] sm:$0xff]  ;;  %v7018_v53 = vld [vmem:[#allocation72_spill] sm:$0xff]  ;;  %v7022_v55 = vld [vmem:[#allocation75_spill] sm:$0xff] }
  0xac   :  { %v690_v43 = vand.u32 4294901760, %v689_v5  ;;  %v684_v52 = vand.u32 4294901760, %v683_v40  ;;  %v696_v58 = vand.u32 4294901760, %v695_v0  ;;  %v6719_v47 = vand.u32 4294901760, %v7016_v2  ;;  %3492 = vmatprep.subr.bf16.mxu0 %v3491_v45  ;;  %3876 = vmatprep.subr.bf16.mxu1 %v3491_v45  ;;  %v7019_v5 = vld [vmem:[#allocation73_spill] sm:$0xff]  ;;  %v7020_v54 = vld [vmem:[#allocation74_spill] sm:$0xff] }
  0xad   :  { %v702_v59 = vand.u32 4294901760, %v701_v21  ;;  %v707_v51 = vsub.f32 %v7015_v42, %v6718_v38  ;;  %v6723_v13 = vand.u32 4294901760, %v7017_v49  ;;  %v714_v9 = vand.u32 4294901760, %v713_v25 }
  0xae   :  { %v719_v0 = vsub.f32 %v7016_v2, %v6719_v47  ;;  %v5643_v21 = vsub.f32 %v5380_v15, %v5380_v15  ;;  %v7021_v45 = vand.u32 4294901760, %v7018_v53  ;;  %v5653_v47 = vsub.f32 %v5575_v34, %v5575_v34 }
  0xaf   :  { %v708_v38 = vand.u32 4294901760, %v707_v51  ;;  %v725_v36 = vsub.f32 %v7017_v49, %v6723_v13  ;;  %v3497_v40 = vpack.c.bf16 %v672_v17, %v660_v24  ;;  %3494 = vmatpush1.bf16.msra.mxu0 %v3493_v16  ;;  %3878 = vmatpush1.bf16.msra.mxu1 %v3493_v16  ;;  %v3499_v15 = vpack.c.bf16 %v690_v43, %v678_v19  ;;  %v7024_v13 = vld [vmem:[#allocation76_spill] sm:$0xff]  ;;  %v7027_v43 = vld [vmem:[#allocation79_spill] sm:$0xff] }
  0xb0   :  { %v737_v25 = vsub.f32 %v7018_v53, %v7021_v45  ;;  %v720_v2 = vand.u32 4294901760, %v719_v0  ;;  %v7023_v51 = vand.u32 4294901760, %v7019_v5  ;;  %v6731_v49 = vand.u32 4294901760, %v7024_v13  ;;  %3496 = vmatprep.subr.bf16.mxu0 %v3495_v35  ;;  %3880 = vmatprep.subr.bf16.mxu1 %v3495_v35 }
  0xb1   :  { %v3501_v45 = vpack.c.bf16 %v696_v58, %v684_v52  ;;  %v3503_v34 = vpack.c.bf16 %v714_v9, %v702_v59  ;;  %v7026_v24 = vand.u32 4294901760, %v7020_v54  ;;  %v726_v42 = vand.u32 4294901760, %v725_v36 }
  0xb2   :  { %v731_v50 = vsub.f32 %v7019_v5, %v7023_v51  ;;  %v3505_v0 = vpack.c.bf16 %v720_v2, %v708_v38  ;;  %v738_v16 = vand.u32 4294901760, %v737_v25  ;;  %v6730_v19 = vand.u32 4294901760, %v7027_v43 }
  0xb3   :  { %v743_v17 = vsub.f32 %v7020_v54, %v7026_v24  ;;  %v7028_v53 = vand.u32 4294901760, %v7022_v55  ;;  %v761_v28 = vsub.f32 %v7024_v13, %v6731_v49  ;;  %v6733_v35 = vand.u32 4294901760, %v5245_v1  ;;  %3498 = vmatpush1.bf16.msra.mxu0 %v3497_v40  ;;  %3882 = vmatpush1.bf16.msra.mxu1 %v3497_v40 }
  0xb4   :  { %v6734_v59 = vand.u32 4294901760, %v5247_v61  ;;  %v732_v9 = vand.u32 4294901760, %v731_v50  ;;  %v7029_v38 = vand.u32 4294901760, %v7025_v18  ;;  %v767_v52 = vsub.f32 %v7027_v43, %v6730_v19  ;;  %3500 = vmatprep.subr.bf16.mxu0 %v3499_v15  ;;  %3884 = vmatprep.subr.bf16.mxu1 %v3499_v15  ;;  %v7030_v19 = vld [vmem:[#allocation89_spill] sm:$0xff] }
  0xb5   :  { %v749_v51 = vsub.f32 %v7022_v55, %v7028_v53  ;;  %v6735_v53 = vand.u32 4294901760, %v5249_v56  ;;  %v773_v58 = vsub.f32 %v5245_v1, %v6733_v35  ;;  %v6740_v2 = vand.u32 4294901760, %v5253_v8 }
  0xb6   :  { %v755_v36 = vsub.f32 %v7025_v18, %v7029_v38  ;;  %v785_v50 = vsub.f32 %v5247_v61, %v6734_v59  ;;  %v6746_v40 = vand.u32 4294901760, %v5255_v33  ;;  %v3507_v25 = vpack.c.bf16 %v738_v16, %v726_v42 }
  0xb7   :  { %v744_v24 = vand.u32 4294901760, %v743_v17  ;;  %v779_v38 = vsub.f32 %v5249_v56, %v6735_v53  ;;  %v6747_v15 = vand.u32 4294901760, %v7030_v19  ;;  %v750_v49 = vand.u32 4294901760, %v749_v51  ;;  %3502 = vmatpush1.bf16.msra.mxu0 %v3501_v45  ;;  %3886 = vmatpush1.bf16.msra.mxu1 %v3501_v45  ;;  %v7031_v53 = vld [vmem:[#allocation90_spill] sm:$0xff] }
  0xb8   :  { %v762_v43 = vand.u32 4294901760, %v761_v28  ;;  %v791_v35 = vsub.f32 %v5253_v8, %v6740_v2  ;;  %v797_v59 = vsub.f32 %v5255_v33, %v6746_v40  ;;  %v756_v42 = vand.u32 4294901760, %v755_v36  ;;  %3504 = vmatprep.subr.bf16.mxu0 %v3503_v34  ;;  %3888 = vmatprep.subr.bf16.mxu1 %v3503_v34  ;;  %v7032_v2 = vld [vmem:[#allocation91_spill] sm:$0xff]  ;;  %v7034_v34 = vld [vmem:[#allocation24_spill] sm:$0xff] }
  0xb9   :  { %v768_v17 = vand.u32 4294901760, %v767_v52  ;;  %v809_v16 = vsub.f32 %v7030_v19, %v6747_v15  ;;  %v6748_v56 = vand.u32 4294901760, %v7031_v53  ;;  %v774_v28 = vand.u32 4294901760, %v773_v58  ;;  %v7033_v52 = vld [vmem:[#allocation93_spill] sm:$0xff] }
  0xba   :  { %v786_v51 = vand.u32 4294901760, %v785_v50  ;;  %v780_v61 = vand.u32 4294901760, %v779_v38  ;;  %v6751_v8 = vand.u32 4294901760, %v7032_v2  ;;  %v792_v1 = vand.u32 4294901760, %v791_v35 }
  0xbb   :  { %v798_v18 = vand.u32 4294901760, %v797_v59  ;;  %v810_v40 = vand.u32 4294901760, %v809_v16  ;;  %v803_v45 = vsub.f32 %v7031_v53, %v6748_v56  ;;  %3506 = vmatpush1.bf16.msra.mxu0 %v3505_v0  ;;  %3890 = vmatpush1.bf16.msra.mxu1 %v3505_v0  ;;  %v3509_v50 = vpack.c.bf16 %v744_v24, %v732_v9 }
  0xbc   :  { %v815_v36 = vsub.f32 %v7032_v2, %v6751_v8  ;;  %v3511_v35 = vpack.c.bf16 %v762_v43, %v750_v49  ;;  %v6752_v59 = vand.u32 4294901760, %v5653_v47  ;;  %3508 = vmatprep.subr.bf16.mxu0 %v3507_v25  ;;  %3892 = vmatprep.subr.bf16.mxu1 %v3507_v25  ;;  %v3513_v38 = vpack.c.bf16 %v768_v17, %v756_v42 }
  0xbd   :  { %v3515_v16 = vpack.c.bf16 %v786_v51, %v774_v28  ;;  %v804_v56 = vand.u32 4294901760, %v803_v45  ;;  %v3517_v19 = vpack.c.bf16 %v792_v1, %v780_v61  ;;  %v3519_v8 = vpack.c.bf16 %v810_v40, %v798_v18  ;;  %v7038_v61 = vld [vmem:[#allocation25_spill] sm:$0xff] }
  0xbe   :  { %v816_v53 = vand.u32 4294901760, %v815_v36  ;;  %v5715_v15 = vpack.c.bf16 %v4487_v10, %v4466_v4  ;;  %v5719_v58 = vpack.c.bf16 %v4532_v20, %v7034_v34  ;;  %v7035_v49 = vand.u32 4294901760, %v7033_v52 }
  0xbf   :  { %v7036_v43 = vand.u32 4294901760, %v5544_v7  ;;  %v7037_v25 = vand.u32 4294901760, %v5643_v21  ;;  %v5732_v1 = vpack.c.bf16 %v4543_v23, %v7038_v61  ;;  %3510 = vmatpush1.bf16.msra.mxu0 %v3509_v50  ;;  %3894 = vmatpush1.bf16.msra.mxu1 %v3509_v50  ;;  %v839_v40 = vsub.f32 %v5653_v47, %v6752_v59 }
  0xc0   :  { %v821_v0 = vsub.f32 %v7033_v52, %v7035_v49  ;;  %v5739_v24 = vpack.c.bf16 %v4562_v27, %v4560_v26  ;;  %v5743_v42 = vpack.c.bf16 %v4591_v29, %v4580_v31  ;;  %3512 = vmatprep.subr.bf16.mxu0 %v3511_v35  ;;  %3896 = vmatprep.subr.bf16.mxu1 %v3511_v35 }
  0xc1   :  { %v833_v9 = vsub.f32 %v5544_v7, %v7036_v43  ;;  %v827_v18 = vsub.f32 %v5643_v21, %v7037_v25  ;;  %v3521_v17 = vpack.c.bf16 %v816_v53, %v804_v56  ;;  %v5747_v28 = vpack.c.bf16 %v4619_v39, %v4606_v37  ;;  %v7039_v43 = vld [vmem:[#allocation51_spill] sm:$0xff]  ;;  %v7040_v25 = vld [vmem:[#allocation52_spill] sm:$0xff] }
  0xc2   :  { %v5751_v51 = vpack.c.bf16 %v4640_v62, %v4638_v60  ;;  %v5755_v45 = vpack.c.bf16 %v4657_v11, %v4655_v6  ;;  %v5759_v36 = vpack.c.bf16 %v4696_v22, %v4671_v14  ;;  %v5763_v50 = vpack.c.bf16 %v4748_v46, %v4720_v32  ;;  %v7042_v46 = vld [vmem:[#allocation54_spill] sm:$0xff] }
  0xc3   :  { %v5767_v56 = vpack.c.bf16 %v4752_v63, %v4750_v57  ;;  %v5771_v53 = vpack.c.bf16 %v4776_v41, %v4774_v30  ;;  %v5775_v35 = vpack.c.bf16 %v4804_v3, %v4793_v44  ;;  %v5779_v49 = vpack.c.bf16 %v4868_v48, %v4820_v12  ;;  %3514 = vmatpush1.bf16.msra.mxu0 %v3513_v38  ;;  %v7041_v57 = vld [vmem:[#allocation53_spill] sm:$0xff]  ;;  %v7043_v41 = vld [vmem:[#allocation55_spill] sm:$0xff]  ;;  %v7044_v30 = vld [vmem:[#allocation56_spill] sm:$0xff] }
  0xc4   :  { %v5783_v59 = vpack.c.bf16 %v7040_v25, %v7039_v43  ;;  %3898 = vmatpush1.bf16.msra.mxu1 %v3513_v38  ;;  %v822_v63 = vand.u32 4294901760, %v821_v0  ;;  %v5787_v32 = vpack.c.bf16 %v7042_v46, %v7041_v57  ;;  %v5791_v22 = vpack.c.bf16 %v7044_v30, %v7043_v41  ;;  %v7045_v3 = vld [vmem:[#allocation59_spill] sm:$0xff]  ;;  %v7046_v44 = vld [vmem:[#allocation61_spill] sm:$0xff]  ;;  %3516 = vmatprep.subr.bf16.mxu0 %v3515_v16  ;;  %v7047_v25 = vld [vmem:[#allocation62_spill] sm:$0xff] }
  0xc5   :  { %v5795_v14 = vpack.c.bf16 %v7046_v44, %v7045_v3  ;;  %3900 = vmatprep.subr.bf16.mxu1 %v3515_v16  ;;  %v834_v48 = vand.u32 4294901760, %v833_v9  ;;  %v7048_v43 = vld [vmem:[#allocation63_spill] sm:$0xff]  ;;  %v7049_v38 = vld [vmem:[#allocation65_spill] sm:$0xff]  ;;  %v7050_v0 = vld [vmem:[#allocation66_spill] sm:$0xff]  ;;  %v5815_v16 = vpack.c.bf16 %v7020_v54, %v7019_v5  ;;  %v5819_v9 = vpack.c.bf16 %v7024_v13, %v7022_v55 }
  0xc6   :  { %v5799_v12 = vpack.c.bf16 %v7048_v43, %v7047_v25  ;;  %v5803_v11 = vpack.c.bf16 %v7050_v0, %v7049_v38  ;;  %v7051_v46 = vld [vmem:[#allocation67_spill] sm:$0xff]  ;;  %v7052_v57 = vld [vmem:[#allocation68_spill] sm:$0xff]  ;;  %v7053_v30 = vld [vmem:[#allocation70_spill] sm:$0xff] }
  0xc7   :  { %v5807_v6 = vpack.c.bf16 %v7052_v57, %v7051_v46  ;;  %v7054_v41 = vld [vmem:[#allocation72_spill] sm:$0xff]  ;;  %v7055_v43 = vld [vmem:[#allocation78_spill] sm:$0xff]  ;;  %v7056_v25 = vld [vmem:[#allocation79_spill] sm:$0xff]  ;;  %3518 = vmatpush1.bf16.msra.mxu0 %v3517_v19 }
  0xc8   :  { %v5811_v62 = vpack.c.bf16 %v7054_v41, %v7053_v30  ;;  %v5823_v0 = vpack.c.bf16 %v7056_v25, %v7055_v43  ;;  %v7057_v38 = vld [vmem:[#allocation84_spill] sm:$0xff]  ;;  %v7058_v44 = vld [vmem:[#allocation85_spill] sm:$0xff]  ;;  %v7059_v46 = vld [vmem:[#allocation86_spill] sm:$0xff]  ;;  %3902 = vmatpush1.bf16.msra.mxu1 %v3517_v19  ;;  %v828_v25 = vand.u32 4294901760, %v827_v18  ;;  %v840_v43 = vand.u32 4294901760, %v839_v40  ;;  %3520 = vmatprep.subr.bf16.mxu0 %v3519_v8 }
  0xc9   :  { %v5827_v57 = vpack.c.bf16 %v7058_v44, %v7057_v38  ;;  %v7060_v3 = vld [vmem:[#allocation87_spill] sm:$0xff]  ;;  %v7061_v30 = vld [vmem:[#allocation89_spill] sm:$0xff]  ;;  %v7062_v5 = vld [vmem:[#allocation90_spill] sm:$0xff]  ;;  %v5843_v44 = vpack.c.bf16 %v5544_v7, %v7033_v52  ;;  %3904 = vmatprep.subr.bf16.mxu1 %v3519_v8 }
  0xca   :  { %v5831_v41 = vpack.c.bf16 %v7060_v3, %v7059_v46  ;;  %v5835_v54 = vpack.c.bf16 %v7061_v30, %v5255_v33  ;;  %v5839_v13 = vpack.c.bf16 %v7032_v2, %v7062_v5  ;;  %v5847_v3 = vpack.c.bf16 %v5653_v47, %v5643_v21  ;;  %v7063_v2 = vld [vmem:[#allocation20_spill] sm:$0xff]  ;;  %v7064_v19 = vld [vmem:[#allocation21_spill] sm:$0xff]  ;;  %v7082_v8 = vld [vmem:[#allocation30_spill] sm:$0xff] }
  0xcb   :  { %v3523_v30 = vpack.c.bf16 %v834_v48, %v822_v63  ;;  %3522 = vmatpush1.bf16.msra.mxu0 %v3521_v17  ;;  %v3525_v33 = vpack.c.bf16 %v840_v43, %v828_v25  ;;  %v3527_v18 = vpack.c.bf16 %v7064_v19, %v7063_v2  ;;  %v7065_v40 = vld [vmem:[#allocation80_spill] sm:$0xff]  ;;  %v7066_v7 = vld [vmem:[#allocation101_spill] sm:$0xff]  ;;  %v7067_v63 = vld [vmem:[#allocation99_spill] sm:$0xff]  ;;  %vm7083_vm8 = vnez %v7082_v8 }
  0xcc   :  { %3906 = vmatpush1.bf16.msra.mxu1 %v3521_v17  ;;  %v7100_v17 = vld [vmem:[#allocation60_spill] sm:$0xff]  ;;  %v7118_v43 = vld [vmem:[#allocation97_spill] sm:$0xff]  ;;  %v7120_v25 = vld [vmem:[#allocation98_spill] sm:$0xff] }
  0xcd   :  { %3524 = vmatprep.subr.bf16.mxu0 %v3523_v30  ;;  %3908 = vmatprep.subr.bf16.mxu1 %v3523_v30  ;;  %v7068_v30 = vld [vmem:[#allocation102_spill] sm:$0xff] }
  0xcf   :  { %3526 = vmatpush1.bf16.msra.mxu0 %v3525_v33 }
  0xd0   :  { %3910 = vmatpush1.bf16.msra.mxu1 %v3525_v33  ;;  %3528 = vmatprep.subr.bf16.mxu0 %v3527_v18  ;;  %v7081_v33 = vld [vmem:[#allocation28_spill] sm:$0xff] }
  0xd1   :  { %3912 = vmatprep.subr.bf16.mxu1 %v3527_v18  ;;  %v7125_v18 = vand.u32 4294901760, %v7064_v19  ;;  %v7130_v19 = vand.u32 4294901760, %v4532_v20  ;;  %v7136_v20 = vand.u32 4294901760, %v4562_v27  ;;  %v7143_v27 = vand.u32 4294901760, %v4638_v60  ;;  %v7154_v60 = vld [vmem:[#allocation37_spill] sm:$0xff] }
  0xd2   :  { %845 = vmatmul.mubr.f32.vlgmr.msra.gmra.mrb[0].mxu0 %v7065_v40 }
  0xd3   :  { %2146 = vmatmul.mubr.f32.vlgmr.msra.gmra.mrb[0].mxu1 %v7066_v7  ;;  %3530 = vmatpush1.bf16.msra.mxu0 %v5715_v15 }
  0xd4   :  { %3914 = vmatpush1.bf16.msra.mxu1 %v5715_v15  ;;  %3532 = vmatprep.subr.bf16.mxu0 %v5719_v58  ;;  %v7088_v15 = vld [vmem:[#allocation41_spill] sm:$0xff] }
  0xd5   :  { %3916 = vmatprep.subr.bf16.mxu1 %v5719_v58  ;;  %1045 = vmatprep.mubr.f32.mxu0 %v7067_v63  ;;  %v7090_v58 = vld [vmem:[#allocation44_spill] sm:$0xff] }
  0xd6   :  { %2346 = vmatprep.mubr.f32.mxu1 %v7068_v30 }
  0xd7   :  { %3534 = vmatpush1.bf16.msra.mxu0 %v5732_v1 }
  0xd8   :  { %3918 = vmatpush1.bf16.msra.mxu1 %v5732_v1  ;;  %3536 = vmatprep.subr.bf16.mxu0 %v5739_v24  ;;  %v7094_v1 = vld [vmem:[#allocation49_spill] sm:$0xff] }
  0xd9   :  { %3920 = vmatprep.subr.bf16.mxu1 %v5739_v24  ;;  %v7096_v24 = vld [vmem:[#allocation57_spill] sm:$0xff] }
  0xdb   :  { %3538 = vmatpush1.bf16.msra.mxu0 %v5743_v42 }
  0xdc   :  { %3922 = vmatpush1.bf16.msra.mxu1 %v5743_v42  ;;  %3540 = vmatprep.subr.bf16.mxu0 %v5747_v28  ;;  %v7098_v42 = vld [vmem:[#allocation58_spill] sm:$0xff] }
  0xdd   :  { %3924 = vmatprep.subr.bf16.mxu1 %v5747_v28  ;;  %v7102_v28 = vld [vmem:[#allocation64_spill] sm:$0xff] }
  0xdf   :  { %3542 = vmatpush1.bf16.msra.mxu0 %v5751_v51 }
  0xe0   :  { %3926 = vmatpush1.bf16.msra.mxu1 %v5751_v51  ;;  %3544 = vmatprep.subr.bf16.mxu0 %v5755_v45  ;;  %v7104_v51 = vld [vmem:[#allocation69_spill] sm:$0xff] }
  0xe1   :  { %3928 = vmatprep.subr.bf16.mxu1 %v5755_v45  ;;  %v7106_v45 = vld [vmem:[#allocation71_spill] sm:$0xff] }
  0xe3   :  { %3546 = vmatpush1.bf16.msra.mxu0 %v5759_v36 }
  0xe4   :  { %3930 = vmatpush1.bf16.msra.mxu1 %v5759_v36  ;;  %3548 = vmatprep.subr.bf16.mxu0 %v5763_v50  ;;  %v7108_v36 = vld [vmem:[#allocation77_spill] sm:$0xff] }
  0xe5   :  { %3932 = vmatprep.subr.bf16.mxu1 %v5763_v50  ;;  %v7109_v50 = vld [vmem:[#allocation81_spill] sm:$0xff] }
  0xe7   :  { %3550 = vmatpush1.bf16.msra.mxu0 %v5767_v56 }
  0xe8   :  { %3934 = vmatpush1.bf16.msra.mxu1 %v5767_v56  ;;  %3552 = vmatprep.subr.bf16.mxu0 %v5771_v53  ;;  %v7111_v56 = vld [vmem:[#allocation82_spill] sm:$0xff] }
  0xe9   :  { %3936 = vmatprep.subr.bf16.mxu1 %v5771_v53  ;;  %v7112_v53 = vld [vmem:[#allocation83_spill] sm:$0xff] }
  0xeb   :  { %3554 = vmatpush1.bf16.msra.mxu0 %v5775_v35 }
  0xec   :  { %3938 = vmatpush1.bf16.msra.mxu1 %v5775_v35  ;;  %3556 = vmatprep.subr.bf16.mxu0 %v5779_v49  ;;  %v7114_v35 = vld [vmem:[#allocation92_spill] sm:$0xff] }
  0xed   :  { %3940 = vmatprep.subr.bf16.mxu1 %v5779_v49  ;;  %v7116_v49 = vld [vmem:[#allocation94_spill] sm:$0xff] }
  0xef   :  { %3558 = vmatpush1.bf16.msra.mxu0 %v5783_v59 }
  0xf0   :  { %3942 = vmatpush1.bf16.msra.mxu1 %v5783_v59  ;;  %3560 = vmatprep.subr.bf16.mxu0 %v5787_v32  ;;  %v7092_v59 = vld [vmem:[#allocation48_spill] sm:$0xff] }
  0xf1   :  { %3944 = vmatprep.subr.bf16.mxu1 %v5787_v32  ;;  %v7075_v32 = vand.u32 4294901760, %v7067_v63 }
  0xf3   :  { %3562 = vmatpush1.bf16.msra.mxu0 %v5791_v22 }
  0xf4   :  { %3946 = vmatpush1.bf16.msra.mxu1 %v5791_v22  ;;  %3564 = vmatprep.subr.bf16.mxu0 %v5795_v14 }
  0xf5   :  { %3948 = vmatprep.subr.bf16.mxu1 %v5795_v14  ;;  %v7072_v14 = vld [vmem:[#allocation103_spill] sm:$0xff] }
  0xf7   :  { %3566 = vmatpush1.bf16.msra.mxu0 %v5799_v12 }
  0xf8   :  { %3950 = vmatpush1.bf16.msra.mxu1 %v5799_v12  ;;  %3568 = vmatprep.subr.bf16.mxu0 %v5803_v11 }
  0xf9   :  { %3952 = vmatprep.subr.bf16.mxu1 %v5803_v11  ;;  %v7071_v11 = vld [vmem:[#allocation95_spill] sm:$0xff] }
  0xfb   :  { %3570 = vmatpush1.bf16.msra.mxu0 %v5807_v6 }
  0xfc   :  { %3954 = vmatpush1.bf16.msra.mxu1 %v5807_v6  ;;  %3572 = vmatprep.subr.bf16.mxu0 %v5811_v62 }
  0xfd   :  { %3956 = vmatprep.subr.bf16.mxu1 %v5811_v62  ;;  %v7069_v62 = vmov 1.0|1.0  }
  0xff   :  { %3574 = vmatpush1.bf16.msra.mxu0 %v5815_v16 }
 0x100   :  { %3958 = vmatpush1.bf16.msra.mxu1 %v5815_v16  ;;  %3576 = vmatprep.subr.bf16.mxu0 %v5819_v9  ;;  %v7132_v16 = vand.u32 4294901760, %v7072_v14 }
 0x101   :  { %3960 = vmatprep.subr.bf16.mxu1 %v5819_v9  ;;  %v7124_v9 = vand.u32 4294901760, %v7063_v2  ;;  %v7129_v2 = vand.u32 4294901760, %v7034_v34  ;;  %v7135_v34 = vand.u32 4294901760, %v4560_v26  ;;  %v7142_v26 = vand.u32 4294901760, %v4619_v39  ;;  %v7152_v39 = vld [vmem:[#allocation35_spill] sm:$0xff] }
 0x103   :  { %3578 = vmatpush1.bf16.msra.mxu0 %v5823_v0  ;;  %v3655_v63 = vpack.c.bf16 %v7125_v18, %v7124_v9  ;;  %v3659_v9 = vpack.c.bf16 %v7130_v19, %v7129_v2  ;;  %v7131_v18 = vand.u32 4294901760, %v7071_v11  ;;  %v7144_v2 = vld [vmem:[#allocation29_spill] sm:$0xff] }
 0x104   :  { %3962 = vmatpush1.bf16.msra.mxu1 %v5823_v0  ;;  %3580 = vmatprep.subr.bf16.mxu0 %v5827_v57  ;;  %v7145_v19 = vand.u32 4294901760, %v7144_v2 }
 0x105   :  { %3964 = vmatprep.subr.bf16.mxu1 %v5827_v57  ;;  %v7076_v57 = vand.u32 4294901760, %v7068_v30 }
 0x107   :  { %3582 = vmatpush1.bf16.msra.mxu0 %v5831_v41 }
 0x108   :  { %3966 = vmatpush1.bf16.msra.mxu1 %v5831_v41  ;;  %3584 = vmatprep.subr.bf16.mxu0 %v5835_v54  ;;  %v7253_v41 = vld [vmem:[#allocation16_spill] sm:$0xff] }
 0x109   :  { %3968 = vmatprep.subr.bf16.mxu1 %v5835_v54  ;;  %v7084_v54 = vld [vmem:[#allocation34_spill] sm:$0xff] }
 0x10a   :  { %vm7085_vm1 = vnez %v7084_v54 }
 0x10b   :  { %3586 = vmatpush1.bf16.msra.mxu0 %v5839_v13 }
 0x10c   :  { %3970 = vmatpush1.bf16.msra.mxu1 %v5839_v13  ;;  %3588 = vmatprep.subr.bf16.mxu0 %v5843_v44  ;;  %v7086_v13 = vld [vmem:[#allocation36_spill] sm:$0xff] }
 0x10d   :  { %3972 = vmatprep.subr.bf16.mxu1 %v5843_v44  ;;  %vm7087_vm0 = vnez %v7086_v13 }
 0x10f   :  { %3590 = vmatpush1.bf16.msra.mxu0 %v5847_v3 }
 0x110   :  { %3974 = vmatpush1.bf16.msra.mxu1 %v5847_v3  ;;  %3592 = vmatprep.subr.msk.bf16.mxu0 %vm4452_vm7, %v7069_v62 }
 0x111   :  { %3976 = vmatprep.subr.msk.bf16.mxu1 %vm4452_vm7, %v7069_v62 }
 0x112   :  { %1048 = vmatmul.mubr.f32.vlgmr.msra.gmra.mrb[0].mxu0 %v7071_v11  ;;  %v7138_v11 = vld [vmem:[#allocation100_spill] sm:$0xff] }
 0x113   :  { %2349 = vmatmul.mubr.f32.vlgmr.msra.gmra.mrb[0].mxu1 %v7072_v14  ;;  %3594 = vmatpush1.bf16.msk.msra.mxu0 %vm4444_vm5, %v7069_v62  ;;  %v7139_v14 = vand.u32 4294901760, %v4580_v31  ;;  %v7146_v31 = vld [vmem:[#allocation31_spill] sm:$0xff] }
 0x114   :  { %3978 = vmatpush1.bf16.msk.msra.mxu1 %vm4444_vm5, %v7069_v62  ;;  %3596 = vmatprep.subr.msk.bf16.mxu0 %vm4468_vm10, %v7069_v62 }
 0x115   :  { %3980 = vmatprep.subr.msk.bf16.mxu1 %vm4468_vm10, %v7069_v62  ;;  %1185 = vmatprep.mubr.f32.mxu0 %v7075_v32  ;;  %v7127_v32 = vand.u32 4294901760, %v4466_v4  ;;  %v7133_v4 = vand.u32 4294901760, %v7038_v61  ;;  %v7140_v61 = vand.u32 4294901760, %v4591_v29  ;;  %v7148_v29 = vld [vmem:[#allocation32_spill] sm:$0xff] }
 0x116   :  { %2486 = vmatprep.mubr.f32.mxu1 %v7076_v57  ;;  %v7128_v57 = vand.u32 4294901760, %v4487_v10  ;;  %v7134_v10 = vand.u32 4294901760, %v4543_v23  ;;  %v7141_v23 = vand.u32 4294901760, %v4606_v37  ;;  %v7150_v37 = vld [vmem:[#allocation33_spill] sm:$0xff] }
 0x117   :  { %3598 = vmatpush1.bf16.msk.msra.mxu0 %vm4512_vm11, %v7069_v62 }
 0x118   :  { %3982 = vmatpush1.bf16.msk.msra.mxu1 %vm4512_vm11, %v7069_v62  ;;  %3600 = vmatprep.subr.msk.bf16.mxu0 %vm4522_vm14, %v7069_v62  ;;  %v3657_v0 = vpack.c.bf16 %v7128_v57, %v7127_v32  ;;  %v3661_v32 = vpack.c.bf16 %v7134_v10, %v7133_v4  ;;  %v7137_v57 = vld [vmem:[#allocation96_spill] sm:$0xff]  ;;  %v7149_v4 = vand.u32 4294901760, %v7148_v29 }
 0x119   :  { %3984 = vmatprep.subr.msk.bf16.mxu1 %vm4522_vm14, %v7069_v62 }
 0x11b   :  { %3602 = vmatpush1.bf16.msk.msra.mxu0 %vm4573_vm2, %v7069_v62 }
 0x11c   :  { %3986 = vmatpush1.bf16.msk.msra.mxu1 %vm4573_vm2, %v7069_v62  ;;  %3604 = vmatprep.subr.msk.bf16.mxu0 %vm4583_vm4, %v7069_v62 }
 0x11d   :  { %3988 = vmatprep.subr.msk.bf16.mxu1 %vm4583_vm4, %v7069_v62 }
 0x11f   :  { %3606 = vmatpush1.bf16.msk.msra.mxu0 %vm4627_vm15, %v7069_v62 }
 0x120   :  { %3990 = vmatpush1.bf16.msk.msra.mxu1 %vm4627_vm15, %v7069_v62  ;;  %3608 = vmatprep.subr.msk.bf16.mxu0 %vm7083_vm8, %v7069_v62  ;;  %vm7089_vm15 = vnez %v7088_v15 }
 0x121   :  { %3992 = vmatprep.subr.msk.bf16.mxu1 %vm7083_vm8, %v7069_v62  ;;  %vm7091_vm8 = vnez %v7090_v58 }
 0x123   :  { %3610 = vmatpush1.bf16.msk.msra.mxu0 %vm7085_vm1, %v7069_v62 }
 0x124   :  { %3994 = vmatpush1.bf16.msk.msra.mxu1 %vm7085_vm1, %v7069_v62  ;;  %3612 = vmatprep.subr.msk.bf16.mxu0 %vm7087_vm0, %v7069_v62  ;;  %vm7093_vm1 = vnez %v7092_v59 }
 0x125   :  { %3996 = vmatprep.subr.msk.bf16.mxu1 %vm7087_vm0, %v7069_v62  ;;  %vm7095_vm0 = vnez %v7094_v1 }
 0x127   :  { %3614 = vmatpush1.bf16.msk.msra.mxu0 %vm7089_vm15, %v7069_v62 }
 0x128   :  { %3998 = vmatpush1.bf16.msk.msra.mxu1 %vm7089_vm15, %v7069_v62  ;;  %3616 = vmatprep.subr.msk.bf16.mxu0 %vm7091_vm8, %v7069_v62  ;;  %vm7097_vm15 = vnez %v7096_v24 }
 0x129   :  { %4000 = vmatprep.subr.msk.bf16.mxu1 %vm7091_vm8, %v7069_v62  ;;  %vm7099_vm8 = vnez %v7098_v42 }
 0x12b   :  { %3618 = vmatpush1.bf16.msk.msra.mxu0 %vm7093_vm1, %v7069_v62 }
 0x12c   :  { %4002 = vmatpush1.bf16.msk.msra.mxu1 %vm7093_vm1, %v7069_v62  ;;  %3620 = vmatprep.subr.msk.bf16.mxu0 %vm7095_vm0, %v7069_v62  ;;  %vm7101_vm1 = vnez %v7100_v17 }
 0x12d   :  { %4004 = vmatprep.subr.msk.bf16.mxu1 %vm7095_vm0, %v7069_v62  ;;  %vm7103_vm0 = vnez %v7102_v28 }
 0x12f   :  { %3622 = vmatpush1.bf16.msk.msra.mxu0 %vm7097_vm15, %v7069_v62 }
 0x130   :  { %4006 = vmatpush1.bf16.msk.msra.mxu1 %vm7097_vm15, %v7069_v62  ;;  %3624 = vmatprep.subr.msk.bf16.mxu0 %vm7099_vm8, %v7069_v62  ;;  %vm7105_vm15 = vnez %v7104_v51 }
 0x131   :  { %4008 = vmatprep.subr.msk.bf16.mxu1 %vm7099_vm8, %v7069_v62  ;;  %vm7107_vm8 = vnez %v7106_v45 }
 0x133   :  { %3626 = vmatpush1.bf16.msk.msra.mxu0 %vm7101_vm1, %v7069_v62 }
 0x134   :  { %4010 = vmatpush1.bf16.msk.msra.mxu1 %vm7101_vm1, %v7069_v62  ;;  %3628 = vmatprep.subr.msk.bf16.mxu0 %vm7103_vm0, %v7069_v62 }
 0x135   :  { %4012 = vmatprep.subr.msk.bf16.mxu1 %vm7103_vm0, %v7069_v62  ;;  %vm7110_vm0 = vnez %v7109_v50 }
 0x137   :  { %3630 = vmatpush1.bf16.msk.msra.mxu0 %vm7105_vm15, %v7069_v62 }
 0x138   :  { %4014 = vmatpush1.bf16.msk.msra.mxu1 %vm7105_vm15, %v7069_v62  ;;  %3632 = vmatprep.subr.msk.bf16.mxu0 %vm7107_vm8, %v7069_v62 }
 0x139   :  { %4016 = vmatprep.subr.msk.bf16.mxu1 %vm7107_vm8, %v7069_v62  ;;  %vm7113_vm8 = vnez %v7112_v53 }
 0x13b   :  { %3634 = vmatpush1.bf16.msk.msra.mxu0 %vm5144_vm9, %v7069_v62 }
 0x13c   :  { %4018 = vmatpush1.bf16.msk.msra.mxu1 %vm5144_vm9, %v7069_v62  ;;  %3636 = vmatprep.subr.msk.bf16.mxu0 %vm7110_vm0, %v7069_v62  ;;  %vm7115_vm9 = vnez %v7114_v35 }
 0x13d   :  { %4020 = vmatprep.subr.msk.bf16.mxu1 %vm7110_vm0, %v7069_v62  ;;  %vm7117_vm0 = vnez %v7116_v49 }
 0x13f   :  { %3638 = vmatpush1.bf16.msk.msra.mxu0 %vm5218_vm6, %v7069_v62 }
 0x140   :  { %4022 = vmatpush1.bf16.msk.msra.mxu1 %vm5218_vm6, %v7069_v62  ;;  %3640 = vmatprep.subr.msk.bf16.mxu0 %vm7113_vm8, %v7069_v62  ;;  %vm7119_vm6 = vnez %v7118_v43 }
 0x141   :  { %4024 = vmatprep.subr.msk.bf16.mxu1 %vm7113_vm8, %v7069_v62  ;;  %vm7121_vm8 = vnez %v7120_v25 }
 0x143   :  { %3642 = vmatpush1.bf16.msk.msra.mxu0 %vm7115_vm9, %v7069_v62 }
 0x144   :  { %4026 = vmatpush1.bf16.msk.msra.mxu1 %vm7115_vm9, %v7069_v62  ;;  %3644 = vmatprep.subr.msk.bf16.mxu0 %vm7117_vm0, %v7069_v62 }
 0x145   :  { %4028 = vmatprep.subr.msk.bf16.mxu1 %vm7117_vm0, %v7069_v62 }
 0x147   :  { %3646 = vmatpush1.bf16.msk.msra.mxu0 %vm7119_vm6, %v7069_v62 }
 0x148   :  { %4030 = vmatpush1.bf16.msk.msra.mxu1 %vm7119_vm6, %v7069_v62  ;;  %3648 = vmatprep.subr.msk.bf16.mxu0 %vm7121_vm8, %v7069_v62 }
 0x149   :  { %4032 = vmatprep.subr.msk.bf16.mxu1 %vm7121_vm8, %v7069_v62 }
 0x14b   :  { %3650 = vmatpush1.bf16.msk.msra.mxu0 %vm5415_vm12, %v7069_v62 }
 0x14c   :  { %4034 = vmatpush1.bf16.msk.msra.mxu1 %vm5415_vm12, %v7069_v62  ;;  %3652 = vmatprep.subr.msk.bf16.mxu0 %vm5428_vm3, %v7069_v62 }
 0x14d   :  { %4036 = vmatprep.subr.msk.bf16.mxu1 %vm5428_vm3, %v7069_v62 }
 0x14f   :  { %3654 = vmatpush1.bf16.msk.msra.mxu0 %vm5470_vm13, %v7069_v62 }
 0x150   :  { %4038 = vmatpush1.bf16.msk.msra.mxu1 %vm5470_vm13, %v7069_v62  ;;  %3656 = vmatprep.subr.bf16.mxu0 %v3655_v63 }
 0x151   :  { %4040 = vmatprep.subr.bf16.mxu1 %v3655_v63  ;;  %v3663_v63 = vpack.c.bf16 %v7136_v20, %v7135_v34  ;;  %v7153_v34 = vand.u32 4294901760, %v7152_v39 }
 0x152   :  { %1189 = vmatmul.mubr.f32.vlgmr.msra.gmra.mrb[0].mxu0 %v7131_v18  ;;  %v7147_v18 = vand.u32 4294901760, %v7146_v31  ;;  %v7164_v31 = vld [vmem:[#allocation43_spill] sm:$0xff] }
 0x153   :  { %2490 = vmatmul.mubr.f32.vlgmr.msra.gmra.mrb[0].mxu1 %v7132_v16  ;;  %3658 = vmatpush1.bf16.msra.mxu0 %v3657_v0  ;;  %v3667_v16 = vpack.c.bf16 %v7142_v26, %v7141_v23  ;;  %v7158_v23 = vld [vmem:[#allocation39_spill] sm:$0xff] }
 0x154   :  { %4042 = vmatpush1.bf16.msra.mxu1 %v3657_v0  ;;  %3660 = vmatprep.subr.bf16.mxu0 %v3659_v9  ;;  %v3665_v0 = vpack.c.bf16 %v7140_v61, %v7139_v14  ;;  %v3671_v10 = vpack.c.bf16 %v7149_v4, %v7147_v18  ;;  %v7156_v14 = vld [vmem:[#allocation38_spill] sm:$0xff]  ;;  %v7159_v26 = vand.u32 4294901760, %v7158_v23  ;;  %v7165_v18 = vand.u32 4294901760, %v7164_v31  ;;  %v7166_v4 = vld [vmem:[#allocation45_spill] sm:$0xff]  ;;  %v7176_v23 = vld [vmem:[#allocation52_spill] sm:$0xff] }
 0x155   :  { %4044 = vmatprep.subr.bf16.mxu1 %v3659_v9  ;;  %1452 = vmatprep.mubr.f32.mxu0 %v7137_v57  ;;  %v3669_v9 = vpack.c.bf16 %v7145_v19, %v7143_v27  ;;  %v7157_v61 = vand.u32 4294901760, %v7156_v14  ;;  %v7162_v19 = vld [vmem:[#allocation42_spill] sm:$0xff] }
 0x156   :  { %2753 = vmatprep.mubr.f32.mxu1 %v7138_v11 }
 0x157   :  { %3662 = vmatpush1.bf16.msra.mxu0 %v3661_v32 }
 0x158   :  { %4046 = vmatpush1.bf16.msra.mxu1 %v3661_v32  ;;  %3664 = vmatprep.subr.bf16.mxu0 %v3663_v63  ;;  %v7151_v32 = vand.u32 4294901760, %v7150_v37  ;;  %v7168_v37 = vld [vmem:[#allocation46_spill] sm:$0xff] }
 0x159   :  { %4048 = vmatprep.subr.bf16.mxu1 %v3663_v63  ;;  %v7155_v63 = vand.u32 4294901760, %v7154_v60  ;;  %v7172_v60 = vld [vmem:[#allocation50_spill] sm:$0xff] }
 0x15a   :  { %v3673_v20 = vpack.c.bf16 %v7153_v34, %v7151_v32  ;;  %v7169_v32 = vand.u32 4294901760, %v7168_v37  ;;  %v7170_v34 = vld [vmem:[#allocation47_spill] sm:$0xff] }
 0x15b   :  { %3666 = vmatpush1.bf16.msra.mxu0 %v3665_v0 }
 0x15c   :  { %4050 = vmatpush1.bf16.msra.mxu1 %v3665_v0  ;;  %3668 = vmatprep.subr.bf16.mxu0 %v3667_v16  ;;  %v3675_v0 = vpack.c.bf16 %v7157_v61, %v7155_v63  ;;  %v7173_v63 = vand.u32 4294901760, %v7172_v60  ;;  %v7174_v61 = vld [vmem:[#allocation51_spill] sm:$0xff] }
 0x15d   :  { %4052 = vmatprep.subr.bf16.mxu1 %v3667_v16  ;;  %v7160_v16 = vld [vmem:[#allocation40_spill] sm:$0xff] }
 0x15e   :  { %v7161_v27 = vand.u32 4294901760, %v7160_v16 }
 0x15f   :  { %3670 = vmatpush1.bf16.msra.mxu0 %v3669_v9 }
 0x160   :  { %4054 = vmatpush1.bf16.msra.mxu1 %v3669_v9  ;;  %3672 = vmatprep.subr.bf16.mxu0 %v3671_v10  ;;  %v3677_v2 = vpack.c.bf16 %v7161_v27, %v7159_v26  ;;  %v7163_v9 = vand.u32 4294901760, %v7162_v19  ;;  %v7177_v26 = vand.u32 4294901760, %v7176_v23  ;;  %v7178_v27 = vld [vmem:[#allocation53_spill] sm:$0xff]  ;;  %v7180_v19 = vld [vmem:[#allocation54_spill] sm:$0xff] }
 0x161   :  { %4056 = vmatprep.subr.bf16.mxu1 %v3671_v10  ;;  %v7167_v10 = vand.u32 4294901760, %v7166_v4  ;;  %v7184_v4 = vld [vmem:[#allocation56_spill] sm:$0xff] }
 0x162   :  { %v3679_v29 = vpack.c.bf16 %v7165_v18, %v7163_v9  ;;  %v7181_v9 = vand.u32 4294901760, %v7180_v19  ;;  %v7182_v18 = vld [vmem:[#allocation55_spill] sm:$0xff] }
 0x163   :  { %3674 = vmatpush1.bf16.msra.mxu0 %v3673_v20  ;;  %v3681_v39 = vpack.c.bf16 %v7169_v32, %v7167_v10  ;;  %v7185_v10 = vand.u32 4294901760, %v7184_v4  ;;  %v7186_v32 = vld [vmem:[#allocation59_spill] sm:$0xff] }
 0x164   :  { %4058 = vmatpush1.bf16.msra.mxu1 %v3673_v20  ;;  %3676 = vmatprep.subr.bf16.mxu0 %v3675_v0  ;;  %v7171_v20 = vand.u32 4294901760, %v7170_v34  ;;  %v7188_v34 = vld [vmem:[#allocation61_spill] sm:$0xff] }
 0x165   :  { %4060 = vmatprep.subr.bf16.mxu1 %v3675_v0  ;;  %v7175_v0 = vand.u32 4294901760, %v7174_v61  ;;  %v7192_v61 = vld [vmem:[#allocation63_spill] sm:$0xff] }
 0x166   :  { %v3683_v14 = vpack.c.bf16 %v7173_v63, %v7171_v20  ;;  %v7189_v20 = vand.u32 4294901760, %v7188_v34  ;;  %v7190_v63 = vld [vmem:[#allocation62_spill] sm:$0xff] }
 0x167   :  { %3678 = vmatpush1.bf16.msra.mxu0 %v3677_v2  ;;  %v3685_v16 = vpack.c.bf16 %v7177_v26, %v7175_v0  ;;  %v7193_v0 = vand.u32 4294901760, %v7192_v61  ;;  %v7194_v26 = vld [vmem:[#allocation65_spill] sm:$0xff] }
 0x168   :  { %4062 = vmatpush1.bf16.msra.mxu1 %v3677_v2  ;;  %3680 = vmatprep.subr.bf16.mxu0 %v3679_v29  ;;  %v7179_v2 = vand.u32 4294901760, %v7178_v27  ;;  %v7196_v27 = vld [vmem:[#allocation66_spill] sm:$0xff] }
 0x169   :  { %4064 = vmatprep.subr.bf16.mxu1 %v3679_v29  ;;  %v7183_v29 = vand.u32 4294901760, %v7182_v18  ;;  %v7200_v18 = vld [vmem:[#allocation68_spill] sm:$0xff] }
 0x16a   :  { %v3687_v31 = vpack.c.bf16 %v7181_v9, %v7179_v2  ;;  %v7197_v2 = vand.u32 4294901760, %v7196_v27  ;;  %v7198_v9 = vld [vmem:[#allocation67_spill] sm:$0xff]  ;;  %v7213_v27 = vld [vmem:[#allocation78_spill] sm:$0xff] }
 0x16b   :  { %3682 = vmatpush1.bf16.msra.mxu0 %v3681_v39  ;;  %v3689_v37 = vpack.c.bf16 %v7185_v10, %v7183_v29  ;;  %v7201_v29 = vand.u32 4294901760, %v7200_v18  ;;  %v7202_v10 = vld [vmem:[#allocation70_spill] sm:$0xff]  ;;  %v7217_v18 = vand.u32 4294901760, %v7057_v38  ;;  %v7227_v38 = vand.u32 4294901760, %v7062_v5 }
 0x16c   :  { %4066 = vmatpush1.bf16.msra.mxu1 %v3681_v39  ;;  %3684 = vmatprep.subr.bf16.mxu0 %v3683_v14  ;;  %v7187_v39 = vand.u32 4294901760, %v7186_v32  ;;  %v7204_v32 = vld [vmem:[#allocation72_spill] sm:$0xff] }
 0x16d   :  { %4068 = vmatprep.subr.bf16.mxu1 %v3683_v14  ;;  %v7191_v14 = vand.u32 4294901760, %v7190_v63  ;;  %v7208_v63 = vld [vmem:[#allocation74_spill] sm:$0xff] }
 0x16e   :  { %v3691_v60 = vpack.c.bf16 %v7189_v20, %v7187_v39  ;;  %v7205_v39 = vand.u32 4294901760, %v7204_v32  ;;  %v7206_v20 = vld [vmem:[#allocation73_spill] sm:$0xff] }
 0x16f   :  { %3686 = vmatpush1.bf16.msra.mxu0 %v3685_v16  ;;  %v3693_v23 = vpack.c.bf16 %v7193_v0, %v7191_v14  ;;  %v7209_v14 = vand.u32 4294901760, %v7208_v63  ;;  %v7210_v0 = vand.u32 4294901760, %v7022_v55  ;;  %v7220_v55 = vand.u32 4294901760, %v7059_v46 }
 0x170   :  { %4070 = vmatpush1.bf16.msra.mxu1 %v3685_v16  ;;  %3688 = vmatprep.subr.bf16.mxu0 %v3687_v31  ;;  %v7195_v16 = vand.u32 4294901760, %v7194_v26  ;;  %v7230_v46 = vand.u32 4294901760, %v7033_v52 }
 0x171   :  { %4072 = vmatprep.subr.bf16.mxu1 %v3687_v31  ;;  %v7199_v31 = vand.u32 4294901760, %v7198_v9 }
 0x172   :  { %v3695_v19 = vpack.c.bf16 %v7197_v2, %v7195_v16  ;;  %v7214_v2 = vand.u32 4294901760, %v7213_v27 }
 0x173   :  { %3690 = vmatpush1.bf16.msra.mxu0 %v3689_v37  ;;  %v3697_v4 = vpack.c.bf16 %v7201_v29, %v7199_v31  ;;  %v7218_v29 = vld [vmem:[#allocation85_spill] sm:$0xff] }
 0x174   :  { %4074 = vmatpush1.bf16.msra.mxu1 %v3689_v37  ;;  %3692 = vmatprep.subr.bf16.mxu0 %v3691_v60  ;;  %v7203_v37 = vand.u32 4294901760, %v7202_v10 }
 0x175   :  { %4076 = vmatprep.subr.bf16.mxu1 %v3691_v60  ;;  %v7207_v60 = vand.u32 4294901760, %v7206_v20 }
 0x176   :  { %v3699_v34 = vpack.c.bf16 %v7205_v39, %v7203_v37  ;;  %v7221_v37 = vld [vmem:[#allocation87_spill] sm:$0xff] }
 0x177   :  { %3694 = vmatpush1.bf16.msra.mxu0 %v3693_v23  ;;  %v3701_v61 = vpack.c.bf16 %v7209_v14, %v7207_v60  ;;  %v7222_v32 = vand.u32 4294901760, %v7221_v37  ;;  %v7225_v60 = vld [vmem:[#allocation89_spill] sm:$0xff] }
 0x178   :  { %4078 = vmatpush1.bf16.msra.mxu1 %v3693_v23  ;;  %3696 = vmatprep.subr.bf16.mxu0 %v3695_v19  ;;  %v7211_v23 = vld [vmem:[#allocation76_spill] sm:$0xff]  ;;  %v7226_v63 = vand.u32 4294901760, %v7225_v60 }
 0x179   :  { %4080 = vmatprep.subr.bf16.mxu1 %v3695_v19  ;;  %v7212_v26 = vand.u32 4294901760, %v7211_v23  ;;  %v7215_v19 = vld [vmem:[#allocation79_spill] sm:$0xff]  ;;  %v3709_v39 = vpack.c.bf16 %v7222_v32, %v7220_v55 }
 0x17a   :  { %v7216_v9 = vand.u32 4294901760, %v7215_v19  ;;  %v7234_v19 = vand.u32 4294901760, %v5653_v47 }
 0x17b   :  { %3698 = vmatpush1.bf16.msra.mxu0 %v3697_v4  ;;  %v3703_v16 = vpack.c.bf16 %v7212_v26, %v7210_v0  ;;  %v7231_v26 = vld [vmem:[#allocation107_spill] sm:$0xff] }
 0x17c   :  { %4082 = vmatpush1.bf16.msra.mxu1 %v3697_v4  ;;  %3700 = vmatprep.subr.bf16.mxu0 %v3699_v34  ;;  %v3705_v31 = vpack.c.bf16 %v7216_v9, %v7214_v2  ;;  %v7219_v4 = vand.u32 4294901760, %v7218_v29  ;;  %v7233_v2 = vand.u32 4294901760, %v5643_v21  ;;  %v4295_v21 = vmov 1966171168  }
 0x17d   :  { %4084 = vmatprep.subr.bf16.mxu1 %v3699_v34  ;;  %v7223_v34 = vld [vmem:[#allocation88_spill] sm:$0xff]  ;;  %v2902_v52 = vunpack.c.l.s4 %v4295_v21 }
 0x17e   :  { %v3707_v10 = vpack.c.bf16 %v7219_v4, %v7217_v18  ;;  %v7224_v20 = vand.u32 4294901760, %v7223_v34  ;;  %v3717_v9 = vpack.c.bf16 %v7234_v19, %v7233_v2 }
 0x17f   :  { %3702 = vmatpush1.bf16.msra.mxu0 %v3701_v61  ;;  %v2903_v6 = vunpack.c.0.s8 %v2902_v52 }
 0x180   :  { %4086 = vmatpush1.bf16.msra.mxu1 %v3701_v61  ;;  %3704 = vmatprep.subr.bf16.mxu0 %v3703_v16  ;;  %v3711_v14 = vpack.c.bf16 %v7226_v63, %v7224_v20  ;;  %v7228_v61 = vld [vmem:[#allocation91_spill] sm:$0xff] }
 0x181   :  { %4088 = vmatprep.subr.bf16.mxu1 %v3703_v16  ;;  %v7229_v0 = vand.u32 4294901760, %v7228_v61  ;;  %v7232_v16 = vand.u32 4294901760, %v7231_v26  ;;  %v2906_v44 = vsub.s32 %v2903_v6, %v7253_v41 }
 0x183   :  { %3706 = vmatpush1.bf16.msra.mxu0 %v3705_v31  ;;  %v3713_v23 = vpack.c.bf16 %v7229_v0, %v7227_v38  ;;  %v3715_v27 = vpack.c.bf16 %v7232_v16, %v7230_v46 }
 0x184   :  { %4090 = vmatpush1.bf16.msra.mxu1 %v3705_v31  ;;  %3708 = vmatprep.subr.bf16.mxu0 %v3707_v10 }
 0x185   :  { %4092 = vmatprep.subr.bf16.mxu1 %v3707_v10 }
 0x187   :  { %3710 = vmatpush1.bf16.msra.mxu0 %v3709_v39 }
 0x188   :  { %4094 = vmatpush1.bf16.msra.mxu1 %v3709_v39  ;;  %3712 = vmatprep.subr.bf16.mxu0 %v3711_v14 }
 0x189   :  { %4096 = vmatprep.subr.bf16.mxu1 %v3711_v14 }
 0x18b   :  { %3714 = vmatpush1.bf16.msra.mxu0 %v3713_v23 }
 0x18c   :  { %4098 = vmatpush1.bf16.msra.mxu1 %v3713_v23  ;;  %3716 = vmatprep.subr.bf16.mxu0 %v3715_v27 }
 0x18d   :  { %4100 = vmatprep.subr.bf16.mxu1 %v3715_v27 }
 0x18f   :  { %3718 = vmatpush1.bf16.msra.mxu0 %v3717_v9 }
 0x190   :  { %4102 = vmatpush1.bf16.msra.mxu1 %v3717_v9  ;;  %3720 = vmatprep.subr.msk.bf16.mxu0 %vm4452_vm7, %v7069_v62 }
 0x191   :  { %4104 = vmatprep.subr.msk.bf16.mxu1 %vm4452_vm7, %v7069_v62  ;;  %vm7236_vm7 = vnez %v7082_v8 }
 0x192   :  { %1454 = vmatmul.mubr.f32.vlgmr.msra.gmra.mrb[0].mxu0 %v7065_v40 }
 0x193   :  { %2755 = vmatmul.mubr.f32.vlgmr.msra.gmra.mrb[0].mxu1 %v7066_v7  ;;  %3722 = vmatpush1.bf16.msk.msra.mxu0 %vm4444_vm5, %v7069_v62 }
 0x194   :  { %4106 = vmatpush1.bf16.msk.msra.mxu1 %vm4444_vm5, %v7069_v62  ;;  %3724 = vmatprep.subr.msk.bf16.mxu0 %vm4468_vm10, %v7069_v62  ;;  %vm7235_vm5 = vnez %v7081_v33 }
 0x195   :  { %4108 = vmatprep.subr.msk.bf16.mxu1 %vm4468_vm10, %v7069_v62  ;;  %1589 = vmatprep.mubr.f32.mxu0 %v7137_v57  ;;  %vm7237_vm10 = vnez %v7084_v54 }
 0x196   :  { %2890 = vmatprep.mubr.f32.mxu1 %v7138_v11 }
 0x197   :  { %3726 = vmatpush1.bf16.msk.msra.mxu0 %vm4512_vm11, %v7069_v62 }
 0x198   :  { %4110 = vmatpush1.bf16.msk.msra.mxu1 %vm4512_vm11, %v7069_v62  ;;  %3728 = vmatprep.subr.msk.bf16.mxu0 %vm4522_vm14, %v7069_v62  ;;  %vm7238_vm11 = vnez %v7086_v13 }
 0x199   :  { %4112 = vmatprep.subr.msk.bf16.mxu1 %vm4522_vm14, %v7069_v62  ;;  %vm7239_vm14 = vnez %v7088_v15 }
 0x19b   :  { %3730 = vmatpush1.bf16.msk.msra.mxu0 %vm4573_vm2, %v7069_v62 }
 0x19c   :  { %4114 = vmatpush1.bf16.msk.msra.mxu1 %vm4573_vm2, %v7069_v62  ;;  %3732 = vmatprep.subr.msk.bf16.mxu0 %vm4583_vm4, %v7069_v62  ;;  %vm7240_vm2 = vnez %v7090_v58 }
 0x19d   :  { %4116 = vmatprep.subr.msk.bf16.mxu1 %vm4583_vm4, %v7069_v62  ;;  %vm7241_vm4 = vnez %v7092_v59 }
 0x19f   :  { %3734 = vmatpush1.bf16.msk.msra.mxu0 %vm7235_vm5, %v7069_v62 }
 0x1a0   :  { %4118 = vmatpush1.bf16.msk.msra.mxu1 %vm7235_vm5, %v7069_v62  ;;  %3736 = vmatprep.subr.msk.bf16.mxu0 %vm7236_vm7, %v7069_v62  ;;  %vm7242_vm5 = vnez %v7094_v1 }
 0x1a1   :  { %4120 = vmatprep.subr.msk.bf16.mxu1 %vm7236_vm7, %v7069_v62  ;;  %vm7243_vm7 = vnez %v7096_v24 }
 0x1a3   :  { %3738 = vmatpush1.bf16.msk.msra.mxu0 %vm7237_vm10, %v7069_v62 }
 0x1a4   :  { %4122 = vmatpush1.bf16.msk.msra.mxu1 %vm7237_vm10, %v7069_v62  ;;  %3740 = vmatprep.subr.msk.bf16.mxu0 %vm7238_vm11, %v7069_v62  ;;  %vm7244_vm10 = vnez %v7098_v42 }
 0x1a5   :  { %4124 = vmatprep.subr.msk.bf16.mxu1 %vm7238_vm11, %v7069_v62  ;;  %vm7245_vm11 = vnez %v7102_v28 }
 0x1a7   :  { %3742 = vmatpush1.bf16.msk.msra.mxu0 %vm7239_vm14, %v7069_v62 }
 0x1a8   :  { %4126 = vmatpush1.bf16.msk.msra.mxu1 %vm7239_vm14, %v7069_v62  ;;  %3744 = vmatprep.subr.msk.bf16.mxu0 %vm7240_vm2, %v7069_v62  ;;  %vm7246_vm14 = vnez %v7106_v45 }
 0x1a9   :  { %4128 = vmatprep.subr.msk.bf16.mxu1 %vm7240_vm2, %v7069_v62  ;;  %vm7248_vm2 = vnez %v7109_v50 }
 0x1ab   :  { %3746 = vmatpush1.bf16.msk.msra.mxu0 %vm7241_vm4, %v7069_v62 }
 0x1ac   :  { %4130 = vmatpush1.bf16.msk.msra.mxu1 %vm7241_vm4, %v7069_v62  ;;  %3748 = vmatprep.subr.msk.bf16.mxu0 %vm7242_vm5, %v7069_v62  ;;  %vm7250_vm4 = vnez %v7112_v53 }
 0x1ad   :  { %4132 = vmatprep.subr.msk.bf16.mxu1 %vm7242_vm5, %v7069_v62 }
 0x1af   :  { %3750 = vmatpush1.bf16.msk.msra.mxu0 %vm7243_vm7, %v7069_v62 }
 0x1b0   :  { %4134 = vmatpush1.bf16.msk.msra.mxu1 %vm7243_vm7, %v7069_v62  ;;  %3752 = vmatprep.subr.msk.bf16.mxu0 %vm7244_vm10, %v7069_v62 }
 0x1b1   :  { %4136 = vmatprep.subr.msk.bf16.mxu1 %vm7244_vm10, %v7069_v62 }
 0x1b3   :  { %3754 = vmatpush1.bf16.msk.msra.mxu0 %vm7101_vm1, %v7069_v62 }
 0x1b4   :  { %4138 = vmatpush1.bf16.msk.msra.mxu1 %vm7101_vm1, %v7069_v62  ;;  %3756 = vmatprep.subr.msk.bf16.mxu0 %vm7245_vm11, %v7069_v62  ;;  %vm7247_vm1 = vnez %v7108_v36 }
 0x1b5   :  { %4140 = vmatprep.subr.msk.bf16.mxu1 %vm7245_vm11, %v7069_v62 }
 0x1b7   :  { %3758 = vmatpush1.bf16.msk.msra.mxu0 %vm7105_vm15, %v7069_v62 }
 0x1b8   :  { %4142 = vmatpush1.bf16.msk.msra.mxu1 %vm7105_vm15, %v7069_v62  ;;  %3760 = vmatprep.subr.msk.bf16.mxu0 %vm7246_vm14, %v7069_v62  ;;  %vm7249_vm15 = vnez %v7111_v56 }
 0x1b9   :  { %4144 = vmatprep.subr.msk.bf16.mxu1 %vm7246_vm14, %v7069_v62 }
 0x1bb   :  { %3762 = vmatpush1.bf16.msk.msra.mxu0 %vm7247_vm1, %v7069_v62 }
 0x1bc   :  { %4146 = vmatpush1.bf16.msk.msra.mxu1 %vm7247_vm1, %v7069_v62  ;;  %3764 = vmatprep.subr.msk.bf16.mxu0 %vm7248_vm2, %v7069_v62 }
 0x1bd   :  { %4148 = vmatprep.subr.msk.bf16.mxu1 %vm7248_vm2, %v7069_v62 }
 0x1bf   :  { %3766 = vmatpush1.bf16.msk.msra.mxu0 %vm7249_vm15, %v7069_v62 }
 0x1c0   :  { %4150 = vmatpush1.bf16.msk.msra.mxu1 %vm7249_vm15, %v7069_v62  ;;  %3768 = vmatprep.subr.msk.bf16.mxu0 %vm7250_vm4, %v7069_v62 }
 0x1c1   :  { %4152 = vmatprep.subr.msk.bf16.mxu1 %vm7250_vm4, %v7069_v62 }
 0x1c3   :  { %3770 = vmatpush1.bf16.msk.msra.mxu0 %vm7115_vm9, %v7069_v62 }
 0x1c4   :  { %4154 = vmatpush1.bf16.msk.msra.mxu1 %vm7115_vm9, %v7069_v62  ;;  %3772 = vmatprep.subr.msk.bf16.mxu0 %vm7117_vm0, %v7069_v62 }
 0x1c5   :  { %4156 = vmatprep.subr.msk.bf16.mxu1 %vm7117_vm0, %v7069_v62 }
 0x1c7   :  { %3774 = vmatpush1.bf16.msk.msra.mxu0 %vm7119_vm6, %v7069_v62 }
 0x1c8   :  { %4158 = vmatpush1.bf16.msk.msra.mxu1 %vm7119_vm6, %v7069_v62  ;;  %3776 = vmatprep.subr.msk.bf16.mxu0 %vm7121_vm8, %v7069_v62 }
 0x1c9   :  { %4160 = vmatprep.subr.msk.bf16.mxu1 %vm7121_vm8, %v7069_v62 }
 0x1cb   :  { %3778 = vmatpush1.bf16.msk.msra.mxu0 %vm5415_vm12, %v7069_v62 }
 0x1cc   :  { %4162 = vmatpush1.bf16.msk.msra.mxu1 %vm5415_vm12, %v7069_v62  ;;  %3780 = vmatprep.subr.msk.bf16.mxu0 %vm5428_vm3, %v7069_v62 }
 0x1cd   :  { %4164 = vmatprep.subr.msk.bf16.mxu1 %vm5428_vm3, %v7069_v62 }
 0x1cf   :  { %3782 = vmatpush1.bf16.msk.msra.mxu0 %vm5470_vm13, %v7069_v62 }
 0x1d0   :  { %4166 = vmatpush1.bf16.msk.msra.mxu1 %vm5470_vm13, %v7069_v62 }
 0x1d2   :  { %1591 = vmatmul.mubr.f32.vlgmr.msra.gmra.mrb[0].mxu0 %v7065_v40 }
 0x1d3   :  { %2892 = vmatmul.mubr.f32.vlgmr.msra.gmra.mrb[0].mxu1 %v7066_v7 }
 0x2a5   :  { %v1592_v22 = vpop.f32.mrb[0].mxu0 }
 0x2a6   :  { %v2893_v3 = vpop.f32.mrb[0].mxu1  ;;  %v1594_v12 = vpop.f32.mrb[1].mxu0 }
 0x2a7   :  { %v2895_v48 = vpop.f32.mrb[1].mxu1  ;;  %v1599_v33 = vcombine.low %v1592_v22, %v1594_v12 }
 0x2a8   :  { %v2900_v8 = vcombine.low %v2893_v3, %v2895_v48 }
 0x2a9   :  { %1601 = vst [vmem:[#allocation9] sm:$0xff] %v1599_v33 }
 0x2aa   :  { %v2907_v40 = vrot.slane %v2900_v8, %v2906_v44 }
 0x2ab   :  { %4250 = shalt.err (!%p4247_p9)
}
 0x2ac   :  { %s4251_s26 = scalar_lea.hbm %s6476_s3, 128 }
 0x2ad   :  { %p4252_p10 = scmp.ne.s32.totalorder %s6476_s3, %s4251_s26  ;;  %p4255_p11 = scmp.lt.u32.totalorder %s4251_s26, %s6476_s3 }
 0x2af   :  { %p4257_p12 = pnand %p4255_p11, %p4252_p10 }
 0x2b1   :  { %4260 = shalt.err (!%p4257_p12)
}
 0x2b2   :  { %2930 = dma.vmem_to_hbm [thread:$0]  %s2928_s20, 128, %s6476_s3, [#allocation6]   ;;  %v7254_v7 = vlaneseq  ;;  %v2914_v62 = vrot.slane %v2907_v40, %v2906_v44 }
 0x2b3   :  { %s4261_s7 = scalar_lea.vmem %s2938_s22, 32  ;;  %p4266_p0 = scmp.lt.s32.totalorder %s2938_s22, %s2938_s22 }
 0x2b4   :  { %vm2918_vm9 = vcmp.lt.s32.totalorder %v7254_v7, 256  ;;  %p4262_p13 = scmp.ne.s32.totalorder %s2938_s22, %s4261_s7  ;;  %p4267_p1 = scmp.lt.s32.totalorder %s4261_s7, %s4261_s7 }
 0x2b5   :  { %2920 = vst.msk [vmem:[#allocation10] sm:$0x3] %vm2918_vm9, %v2914_v62 }
 0x2b6   :  { %p4268_p2 = por %p4267_p1, %p4266_p0 }
 0x2b8   :  { %p4269_p3 = pnand %p4268_p2, %p4262_p13 }
 0x2ba   :  { %4272 = shalt.err (!%p4269_p3)
}
 0x2bb   :  { %s4273_s10 = scalar_lea.hbm %s6477_s4, 32 }
 0x2bc   :  { %p4274_p4 = scmp.ne.s32.totalorder %s6477_s4, %s4273_s10  ;;  %p4277_p5 = scmp.lt.u32.totalorder %s4273_s10, %s6477_s4 }
 0x2be   :  { %p4279_p6 = pnand %p4277_p5, %p4274_p4 }
 0x2c0   :  { %4282 = shalt.err (!%p4279_p6)
}
 0x2c1   :  { %2940 = dma.vmem_to_hbm [thread:$0]  %s2938_s22, 32, %s6477_s4, [#allocation11]  }
 0x2c2   :  { %4287 = dma.done.wait [#allocation6], 128  }
 0x2c3   :  { %4288 = vsyncadd [#allocation6], 4294967168 }
 0x2c4   :  { %4289 = dma.done.wait [#allocation11], 32  }
 0x2c5   :  { %4290 = vsyncadd [#allocation11], 4294967264 }
 0x2c6   :  { %2947 = vsyncpa [#allocation5], 1 }
 0x2c7   :  { %2948 = vsyncpa [#allocation8], 1 }
 0x2c8   :  { %2949 = vsyncpa [#allocation6], 1 }
 0x2c9   :  { %2950 = vsyncpa [#allocation11], 1 }

</bundles_post_ra>
